<compile_context>
chip_gen: v5e
topology: v5e:2x2
jax: 0.10.0
libtpu: 0.0.40
codegen_flags: <defaults>
</compile_context>

<pallas_src>
import functools

import jax
import jax.numpy as jnp
import numpy as np
from jax.experimental import pallas as pl
from jax.experimental.pallas import tpu as pltpu


def _mxu_matmul_dtype():
    """bf16 MXU operands on v6e/v7x; all-f32 on v5e and older (no bf16 VPU/EUP)."""
    try:
        kind = jax.devices()[0].device_kind.lower()
    except Exception:
        return jnp.float32
    if ("v6" in kind) or ("v7" in kind) or ("7x" in kind):
        return jnp.bfloat16
    return jnp.float32


def gru_fc_kernel(x_ref, wih_ref, bih_ref, bhn_ref, whh_ref, wfc_ref, bfc_ref,
                  out_ref, ix_ref, *, seq_len):
    """x_ref: (T*RB, I) time-major rows, RB=8 sublane-padded rows per timestep.

    Packed weights use 128-lane gate slabs: [r | z | n], each HP lanes wide.
    bih_ref already contains b_ih + (b_hr, b_hz, 0); bhn_ref is b_hn alone.
    """
    HP, GP = whh_ref.shape            # HP = padded hidden, GP = 3 * HP
    RB = out_ref.shape[0]             # padded rows per timestep (multiple of 8)

    # (1) Input projection for ALL timesteps as one big MXU matmul.
    #     Row t*RB + b holds timestep t, batch row b (rows >= B are zero pad).
    ix_ref[...] = (jnp.dot(x_ref[...], wih_ref[...],
                           preferred_element_type=jnp.float32)
                   + bih_ref[...])                        # (T*RB, GP), f32

    whh = whh_ref[...]                                    # loop-invariant RHS
    bhn = jnp.broadcast_to(bhn_ref[...], (RB, HP))        # hoisted broadcast

    def step(ix_t, h):
        # One fused (RB,HP)x(HP,3HP) MXU matmul per step; f32 accumulation.
        hg = jnp.dot(h.astype(whh.dtype), whh,
                     preferred_element_type=jnp.float32)  # (RB, GP)
        r = jax.nn.sigmoid(ix_t[:, 0:HP] + hg[:, 0:HP])
        z = jax.nn.sigmoid(ix_t[:, HP:2 * HP] + hg[:, HP:2 * HP])
        n = jnp.tanh(ix_t[:, 2 * HP:3 * HP] + r * (hg[:, 2 * HP:3 * HP] + bhn))
        return n + z * (h - n)        # == (1-z)*n + z*h, one fewer multiply

    h = jnp.zeros((RB, HP), jnp.float32)
    if seq_len <= 16:
        # Small T: static unroll — full LLO scheduling visibility of the
        # serial chain; tile-aligned static slices of the VMEM scratch.
        for t in range(seq_len):
            h = step(ix_ref[t * RB:(t + 1) * RB, :], h)
    else:
        # Larger T: moderately unrolled fori_loop keeps vreg pressure and
        # compile size bounded without falling back to grid=(T,).
        def body(t, h):
            i = pl.multiple_of(t * RB, RB)
            return step(ix_ref[pl.ds(i, RB), :], h)
        h = jax.lax.fori_loop(0, seq_len, body, h, unroll=4)

    # (3) Final Linear on the last hidden state.  Padded h lanes are zero and
    #     hit zero rows of the padded fc weight; output is lane-padded to a
    #     full 128-wide slab so the store is an unmasked vst.
    out_ref[...] = (jnp.dot(h.astype(wfc_ref.dtype), wfc_ref[...],
                            preferred_element_type=jnp.float32)
                    + bfc_ref[...]).astype(out_ref.dtype)


@jax.jit
def gru_network_forward(x, w_ih, w_hh, b_ih, b_hh, w_fc, b_fc):
    """Forward pass of GRUNetwork.

    x:    (B, T, I) float32            (batch_first, like the PyTorch module)
    w_ih: (3H, I), w_hh: (3H, H), b_ih/b_hh: (3H,)   -- PyTorch GRU layout (r,z,n)
    w_fc: (O, H),  b_fc: (O,)                         -- PyTorch Linear layout
    Returns (B, O).
    """
    B, T, I = x.shape
    H = w_hh.shape[1]
    O = w_fc.shape[0]
    RB = ((B + 7) // 8) * 8            # sublane-pad each timestep's rows
    HP = ((H + 127) // 128) * 128      # lane-pad hidden to a multiple of 128
    GP = 3 * HP
    OP = ((O + 127) // 128) * 128      # lane-pad fc output
    f32 = jnp.float32
    mmdt = _mxu_matmul_dtype()         # bf16 on v6e/v7x, f32 on v5e

    def pack_gates(w_t):
        # w_t: (3, rows, H)  ->  (rows, 3*HP) with each gate zero-padded to HP lanes.
        rows = w_t.shape[1]
        w_pad = jnp.pad(w_t, ((0, 0), (0, 0), (0, HP - H)))
        return jnp.transpose(w_pad, (1, 0, 2)).reshape(rows, GP)

    # Split per gate, transpose to (in, out), pack into lane-padded slabs.
    w_ih_t = jnp.transpose(w_ih.reshape(3, H, I), (0, 2, 1))                 # (3, I, H)
    w_hh_t = jnp.transpose(w_hh.reshape(3, H, H), (0, 2, 1))                 # (3, H, H)
    wih_p = pack_gates(w_ih_t).astype(mmdt)                                  # (I, GP)
    whh_p = jnp.pad(pack_gates(w_hh_t), ((0, HP - H), (0, 0))).astype(mmdt)  # (HP, GP)

    # Fold the r/z recurrent biases into the input-projection bias; only the
    # n-gate recurrent bias b_hn must be applied inside r*(.) each step.
    b_ih_g = b_ih.reshape(3, H)
    b_hh_g = b_hh.reshape(3, H)
    b_fold = jnp.stack([b_ih_g[0] + b_hh_g[0],
                        b_ih_g[1] + b_hh_g[1],
                        b_ih_g[2]], axis=0)                                  # (3, H)
    bih_p = pack_gates(b_fold.reshape(3, 1, H)).astype(f32)                  # (1, GP)
    bhn_p = jnp.pad(b_hh_g[2], (0, HP - H)).reshape(1, HP).astype(f32)       # (1, HP)

    wfc_p = jnp.pad(w_fc.T, ((0, HP - H), (0, OP - O))).astype(mmdt)         # (HP, OP)
    bfc_p = jnp.pad(b_fc, (0, OP - O)).reshape(1, OP).astype(f32)            # (1, OP)

    # Time-major rows, each timestep padded to a full 8-sublane group:
    # row t*RB + b  <-  x[b, t, :]  for b < B, zeros for b >= B.
    x_tm = jnp.transpose(x, (1, 0, 2))                                       # (T, B, I)
    x_pad = jnp.pad(x_tm, ((0, 0), (0, RB - B), (0, 0)))                     # (T, RB, I)
    x2d = x_pad.reshape(T * RB, I).astype(mmdt)                              # (T*RB, I)

    kernel = functools.partial(gru_fc_kernel, seq_len=T)
    const = lambda i: (0, 0)

    out_padded = pl.pallas_call(
        kernel,
        out_shape=jax.ShapeDtypeStruct((RB, OP), f32),
        grid_spec=pltpu.PrefetchScalarGridSpec(
            num_scalar_prefetch=0,
            grid=(1,),                       # single invocation; loop lives in-kernel
            in_specs=[
                pl.BlockSpec((T * RB, I), const),   # x (time-major, 8-row groups)
                pl.BlockSpec((I, GP), const),       # packed W_ih
                pl.BlockSpec((1, GP), const),       # packed b_ih (+ b_hr, b_hz folded)
                pl.BlockSpec((1, HP), const),       # b_hn (n-gate recurrent bias)
                pl.BlockSpec((HP, GP), const),      # packed W_hh
                pl.BlockSpec((HP, OP), const),      # padded fc weight^T
                pl.BlockSpec((1, OP), const),       # padded fc bias
            ],
            out_specs=pl.BlockSpec((RB, OP), const),
            scratch_shapes=[pltpu.VMEM((T * RB, GP), jnp.float32)],  # hoisted x-projection
        ),
        compiler_params=pltpu.CompilerParams(
            dimension_semantics=("arbitrary",),
        ),
    )(x2d, wih_p, bih_p, bhn_p, whh_p, wfc_p, bfc_p)

    # Drop padded batch rows / padded output lanes.
    return out_padded[:B, :O]


def reference_forward(x, w_ih, w_hh, b_ih, b_hh, w_fc, b_fc):
    """Pure-JAX reference of the same GRU + Linear (PyTorch parameter layout)."""
    B, T, I = x.shape
    H = w_hh.shape[1]
    w_ih_g = w_ih.reshape(3, H, I)
    w_hh_g = w_hh.reshape(3, H, H)
    b_ih_g = b_ih.reshape(3, H)
    b_hh_g = b_hh.reshape(3, H)

    def step(h, x_t):
        i_r = x_t @ w_ih_g[0].T + b_ih_g[0]
        i_z = x_t @ w_ih_g[1].T + b_ih_g[1]
        i_n = x_t @ w_ih_g[2].T + b_ih_g[2]
        h_r = h @ w_hh_g[0].T + b_hh_g[0]
        h_z = h @ w_hh_g[1].T + b_hh_g[1]
        h_n = h @ w_hh_g[2].T + b_hh_g[2]
        r = jax.nn.sigmoid(i_r + h_r)
        z = jax.nn.sigmoid(i_z + h_z)
        n = jnp.tanh(i_n + r * h_n)
        return (1.0 - z) * n + z * h, None

    h0 = jnp.zeros((B, H), jnp.float32)
    h_last, _ = jax.lax.scan(step, h0, jnp.transpose(x, (1, 0, 2)))
    return h_last @ w_fc.T + b_fc


if __name__ == "__main__":
    # Small shapes consistent with the module: (batch, seq, input_size)
    B, T, I, H, O = 2, 8, 4, 32, 8

    key = jax.random.PRNGKey(0)
    ks = jax.random.split(key, 7)
    bound = 1.0 / np.sqrt(H)  # PyTorch default init range for GRU / Linear(H, O)

    x = jax.random.normal(ks[0], (B, T, I), jnp.float32)

    # PyTorch-layout parameters (gate order r, z, n stacked along the first axis).
    w_ih = jax.random.uniform(ks[1], (3 * H, I), jnp.float32, -bound, bound)
    w_hh = jax.random.uniform(ks[2], (3 * H, H), jnp.float32, -bound, bound)
    b_ih = jax.random.uniform(ks[3], (3 * H,), jnp.float32, -bound, bound)
    b_hh = jax.random.uniform(ks[4], (3 * H,), jnp.float32, -bound, bound)
    w_fc = jax.random.uniform(ks[5], (O, H), jnp.float32, -bound, bound)
    b_fc = jax.random.uniform(ks[6], (O,), jnp.float32, -bound, bound)

    out = gru_network_forward(x, w_ih, w_hh, b_ih, b_hh, w_fc, b_fc)
    out = jax.block_until_ready(out)

    ref = reference_forward(x, w_ih, w_hh, b_ih, b_hh, w_fc, b_fc)

    # bf16 MXU operands on v6e/v7x accumulate small rounding error over the
    # T-step recurrence; widen the tolerance accordingly (f32 path stays tight).
    if _mxu_matmul_dtype() == jnp.bfloat16:
        rtol, atol = 3e-2, 3e-2
    else:
        rtol, atol = 1e-5, 1e-5
    np.testing.assert_allclose(np.asarray(out), np.asarray(ref), rtol=rtol, atol=atol)

    print("KERNEL_OK")
</pallas_src>

<mosaic_0001>
module attributes {stable_mosaic.version = 11 : i64} {
  func.func @gru_fc_kernel(%arg0: i32, %arg1: memref<64x4xf32, #tpu.memory_space<vmem>>, %arg2: memref<4x384xf32, #tpu.memory_space<vmem>>, %arg3: memref<1x384xf32, #tpu.memory_space<vmem>>, %arg4: memref<1x128xf32, #tpu.memory_space<vmem>>, %arg5: memref<128x384xf32, #tpu.memory_space<vmem>>, %arg6: memref<128x128xf32, #tpu.memory_space<vmem>>, %arg7: memref<1x128xf32, #tpu.memory_space<vmem>>, %arg8: memref<8x128xf32, #tpu.memory_space<vmem>>, %arg9: memref<64x384xf32, #tpu.memory_space<vmem>>) attributes {dimension_semantics = [#tpu.dimension_semantics<arbitrary>], iteration_bounds = array<i64: 1>, scalar_prefetch = 0 : i64, scratch_operands = 1 : i64, tpu.core_type = #tpu.core_type<tc>, window_params = [{pipeline_mode = #tpu.pipeline_mode<synchronous>, transform_indices = @transform_0, window_bounds = array<i64: 64, 4>}, {pipeline_mode = #tpu.pipeline_mode<synchronous>, transform_indices = @transform_1, window_bounds = array<i64: 4, 384>}, {pipeline_mode = #tpu.pipeline_mode<synchronous>, transform_indices = @transform_2, window_bounds = array<i64: 1, 384>}, {pipeline_mode = #tpu.pipeline_mode<synchronous>, transform_indices = @transform_3, window_bounds = array<i64: 1, 128>}, {pipeline_mode = #tpu.pipeline_mode<synchronous>, transform_indices = @transform_4, window_bounds = array<i64: 128, 384>}, {pipeline_mode = #tpu.pipeline_mode<synchronous>, transform_indices = @transform_5, window_bounds = array<i64: 128, 128>}, {pipeline_mode = #tpu.pipeline_mode<synchronous>, transform_indices = @transform_6, window_bounds = array<i64: 1, 128>}, {pipeline_mode = #tpu.pipeline_mode<synchronous>, transform_indices = @transform_7, window_bounds = array<i64: 8, 128>}]} {
    %c0 = arith.constant 0 : index
    %c0_0 = arith.constant 0 : index
    %0 = vector.load %arg1[%c0, %c0_0] : memref<64x4xf32, #tpu.memory_space<vmem>>, vector<64x4xf32>
    %c0_1 = arith.constant 0 : index
    %c0_2 = arith.constant 0 : index
    %1 = vector.load %arg2[%c0_1, %c0_2] : memref<4x384xf32, #tpu.memory_space<vmem>>, vector<4x384xf32>
    %cst = arith.constant dense<0.000000e+00> : vector<64x384xf32>
    %2 = tpu.matmul %0, %1, %cst {dimension_numbers = #tpu.dot_dimension_numbers<[1], [0], [0], [1], [0, 0, 1, 1], [], []>} : vector<64x4xf32>, vector<4x384xf32>, vector<64x384xf32> -> vector<64x384xf32>
    %c0_3 = arith.constant 0 : index
    %c0_4 = arith.constant 0 : index
    %3 = vector.load %arg3[%c0_3, %c0_4] : memref<1x384xf32, #tpu.memory_space<vmem>>, vector<1x384xf32>
    %4 = vector.broadcast %3 : vector<1x384xf32> to vector<64x384xf32>
    %5 = arith.addf %2, %4 : vector<64x384xf32>
    %c0_5 = arith.constant 0 : index
    %c0_6 = arith.constant 0 : index
    %6 = vector.load %arg9[%c0_5, %c0_6] : memref<64x384xf32, #tpu.memory_space<vmem>>, vector<64x384xf32>
    tpu.vector_store %arg9[%c0_5, %c0_6], %5 {strides = array<i32>} : memref<64x384xf32, #tpu.memory_space<vmem>>, vector<64x384xf32>,
    %c0_7 = arith.constant 0 : index
    %c0_8 = arith.constant 0 : index
    %7 = vector.load %arg5[%c0_7, %c0_8] : memref<128x384xf32, #tpu.memory_space<vmem>>, vector<128x384xf32>
    %c0_9 = arith.constant 0 : index
    %c0_10 = arith.constant 0 : index
    %8 = vector.load %arg4[%c0_9, %c0_10] : memref<1x128xf32, #tpu.memory_space<vmem>>, vector<1x128xf32>
    %9 = vector.shape_cast %8 : vector<1x128xf32> to vector<1x128xf32>
    %10 = vector.broadcast %9 : vector<1x128xf32> to vector<8x128xf32>
    %cst_11 = arith.constant 0.000000e+00 : f32
    %11 = vector.broadcast %cst_11 : f32 to vector<8x128xf32>
    %c0_12 = arith.constant 0 : index
    %c0_13 = arith.constant 0 : index
    %12 = vector.load %arg9[%c0_12, %c0_13] : memref<64x384xf32, #tpu.memory_space<vmem>>, vector<8x384xf32>
    %cst_14 = arith.constant dense<0.000000e+00> : vector<8x384xf32>
    %13 = tpu.matmul %11, %7, %cst_14 {dimension_numbers = #tpu.dot_dimension_numbers<[1], [0], [0], [1], [0, 0, 1, 1], [], []>} : vector<8x128xf32>, vector<128x384xf32>, vector<8x384xf32> -> vector<8x384xf32>
    %14 = vector.extract_strided_slice %12 {offsets = [0, 0], sizes = [8, 128], strides = [1, 1]} : vector<8x384xf32> to vector<8x128xf32>
    %15 = vector.extract_strided_slice %13 {offsets = [0, 0], sizes = [8, 128], strides = [1, 1]} : vector<8x384xf32> to vector<8x128xf32>
    %16 = arith.addf %14, %15 : vector<8x128xf32>
    %17 = arith.negf %16 : vector<8x128xf32>
    %18 = math.exp %17 : vector<8x128xf32>
    %cst_15 = arith.constant 1.000000e+00 : f32
    %19 = vector.broadcast %cst_15 : f32 to vector<8x128xf32>
    %20 = arith.addf %19, %18 : vector<8x128xf32>
    %21 = arith.divf %19, %20 : vector<8x128xf32>
    %22 = vector.extract_strided_slice %12 {offsets = [0, 128], sizes = [8, 128], strides = [1, 1]} : vector<8x384xf32> to vector<8x128xf32>
    %23 = vector.extract_strided_slice %13 {offsets = [0, 128], sizes = [8, 128], strides = [1, 1]} : vector<8x384xf32> to vector<8x128xf32>
    %24 = arith.addf %22, %23 : vector<8x128xf32>
    %25 = arith.negf %24 : vector<8x128xf32>
    %26 = math.exp %25 : vector<8x128xf32>
    %cst_16 = arith.constant 1.000000e+00 : f32
    %27 = vector.broadcast %cst_16 : f32 to vector<8x128xf32>
    %28 = arith.addf %27, %26 : vector<8x128xf32>
    %29 = arith.divf %27, %28 : vector<8x128xf32>
    %30 = vector.extract_strided_slice %12 {offsets = [0, 256], sizes = [8, 128], strides = [1, 1]} : vector<8x384xf32> to vector<8x128xf32>
    %31 = vector.extract_strided_slice %13 {offsets = [0, 256], sizes = [8, 128], strides = [1, 1]} : vector<8x384xf32> to vector<8x128xf32>
    %32 = arith.addf %31, %10 : vector<8x128xf32>
    %33 = arith.mulf %21, %32 : vector<8x128xf32>
    %34 = arith.addf %30, %33 : vector<8x128xf32>
    %35 = math.tanh %34 : vector<8x128xf32>
    %36 = arith.subf %11, %35 : vector<8x128xf32>
    %37 = arith.mulf %29, %36 : vector<8x128xf32>
    %38 = arith.addf %35, %37 : vector<8x128xf32>
    %c8 = arith.constant 8 : index
    %c0_17 = arith.constant 0 : index
    %39 = vector.load %arg9[%c8, %c0_17] : memref<64x384xf32, #tpu.memory_space<vmem>>, vector<8x384xf32>
    %cst_18 = arith.constant dense<0.000000e+00> : vector<8x384xf32>
    %40 = tpu.matmul %38, %7, %cst_18 {dimension_numbers = #tpu.dot_dimension_numbers<[1], [0], [0], [1], [0, 0, 1, 1], [], []>} : vector<8x128xf32>, vector<128x384xf32>, vector<8x384xf32> -> vector<8x384xf32>
    %41 = vector.extract_strided_slice %39 {offsets = [0, 0], sizes = [8, 128], strides = [1, 1]} : vector<8x384xf32> to vector<8x128xf32>
    %42 = vector.extract_strided_slice %40 {offsets = [0, 0], sizes = [8, 128], strides = [1, 1]} : vector<8x384xf32> to vector<8x128xf32>
    %43 = arith.addf %41, %42 : vector<8x128xf32>
    %44 = arith.negf %43 : vector<8x128xf32>
    %45 = math.exp %44 : vector<8x128xf32>
    %cst_19 = arith.constant 1.000000e+00 : f32
    %46 = vector.broadcast %cst_19 : f32 to vector<8x128xf32>
    %47 = arith.addf %46, %45 : vector<8x128xf32>
    %48 = arith.divf %46, %47 : vector<8x128xf32>
    %49 = vector.extract_strided_slice %39 {offsets = [0, 128], sizes = [8, 128], strides = [1, 1]} : vector<8x384xf32> to vector<8x128xf32>
    %50 = vector.extract_strided_slice %40 {offsets = [0, 128], sizes = [8, 128], strides = [1, 1]} : vector<8x384xf32> to vector<8x128xf32>
    %51 = arith.addf %49, %50 : vector<8x128xf32>
    %52 = arith.negf %51 : vector<8x128xf32>
    %53 = math.exp %52 : vector<8x128xf32>
    %cst_20 = arith.constant 1.000000e+00 : f32
    %54 = vector.broadcast %cst_20 : f32 to vector<8x128xf32>
    %55 = arith.addf %54, %53 : vector<8x128xf32>
    %56 = arith.divf %54, %55 : vector<8x128xf32>
    %57 = vector.extract_strided_slice %39 {offsets = [0, 256], sizes = [8, 128], strides = [1, 1]} : vector<8x384xf32> to vector<8x128xf32>
    %58 = vector.extract_strided_slice %40 {offsets = [0, 256], sizes = [8, 128], strides = [1, 1]} : vector<8x384xf32> to vector<8x128xf32>
    %59 = arith.addf %58, %10 : vector<8x128xf32>
    %60 = arith.mulf %48, %59 : vector<8x128xf32>
    %61 = arith.addf %57, %60 : vector<8x128xf32>
    %62 = math.tanh %61 : vector<8x128xf32>
    %63 = arith.subf %38, %62 : vector<8x128xf32>
    %64 = arith.mulf %56, %63 : vector<8x128xf32>
    %65 = arith.addf %62, %64 : vector<8x128xf32>
    %c16 = arith.constant 16 : index
    %c0_21 = arith.constant 0 : index
    %66 = vector.load %arg9[%c16, %c0_21] : memref<64x384xf32, #tpu.memory_space<vmem>>, vector<8x384xf32>
    %cst_22 = arith.constant dense<0.000000e+00> : vector<8x384xf32>
    %67 = tpu.matmul %65, %7, %cst_22 {dimension_numbers = #tpu.dot_dimension_numbers<[1], [0], [0], [1], [0, 0, 1, 1], [], []>} : vector<8x128xf32>, vector<128x384xf32>, vector<8x384xf32> -> vector<8x384xf32>
    %68 = vector.extract_strided_slice %66 {offsets = [0, 0], sizes = [8, 128], strides = [1, 1]} : vector<8x384xf32> to vector<8x128xf32>
    %69 = vector.extract_strided_slice %67 {offsets = [0, 0], sizes = [8, 128], strides = [1, 1]} : vector<8x384xf32> to vector<8x128xf32>
    %70 = arith.addf %68, %69 : vector<8x128xf32>
    %71 = arith.negf %70 : vector<8x128xf32>
    %72 = math.exp %71 : vector<8x128xf32>
    %cst_23 = arith.constant 1.000000e+00 : f32
    %73 = vector.broadcast %cst_23 : f32 to vector<8x128xf32>
    %74 = arith.addf %73, %72 : vector<8x128xf32>
    %75 = arith.divf %73, %74 : vector<8x128xf32>
    %76 = vector.extract_strided_slice %66 {offsets = [0, 128], sizes = [8, 128], strides = [1, 1]} : vector<8x384xf32> to vector<8x128xf32>
    %77 = vector.extract_strided_slice %67 {offsets = [0, 128], sizes = [8, 128], strides = [1, 1]} : vector<8x384xf32> to vector<8x128xf32>
    %78 = arith.addf %76, %77 : vector<8x128xf32>
    %79 = arith.negf %78 : vector<8x128xf32>
    %80 = math.exp %79 : vector<8x128xf32>
    %cst_24 = arith.constant 1.000000e+00 : f32
    %81 = vector.broadcast %cst_24 : f32 to vector<8x128xf32>
    %82 = arith.addf %81, %80 : vector<8x128xf32>
    %83 = arith.divf %81, %82 : vector<8x128xf32>
    %84 = vector.extract_strided_slice %66 {offsets = [0, 256], sizes = [8, 128], strides = [1, 1]} : vector<8x384xf32> to vector<8x128xf32>
    %85 = vector.extract_strided_slice %67 {offsets = [0, 256], sizes = [8, 128], strides = [1, 1]} : vector<8x384xf32> to vector<8x128xf32>
    %86 = arith.addf %85, %10 : vector<8x128xf32>
    %87 = arith.mulf %75, %86 : vector<8x128xf32>
    %88 = arith.addf %84, %87 : vector<8x128xf32>
    %89 = math.tanh %88 : vector<8x128xf32>
    %90 = arith.subf %65, %89 : vector<8x128xf32>
    %91 = arith.mulf %83, %90 : vector<8x128xf32>
    %92 = arith.addf %89, %91 : vector<8x128xf32>
    %c24 = arith.constant 24 : index
    %c0_25 = arith.constant 0 : index
    %93 = vector.load %arg9[%c24, %c0_25] : memref<64x384xf32, #tpu.memory_space<vmem>>, vector<8x384xf32>
    %cst_26 = arith.constant dense<0.000000e+00> : vector<8x384xf32>
    %94 = tpu.matmul %92, %7, %cst_26 {dimension_numbers = #tpu.dot_dimension_numbers<[1], [0], [0], [1], [0, 0, 1, 1], [], []>} : vector<8x128xf32>, vector<128x384xf32>, vector<8x384xf32> -> vector<8x384xf32>
    %95 = vector.extract_strided_slice %93 {offsets = [0, 0], sizes = [8, 128], strides = [1, 1]} : vector<8x384xf32> to vector<8x128xf32>
    %96 = vector.extract_strided_slice %94 {offsets = [0, 0], sizes = [8, 128], strides = [1, 1]} : vector<8x384xf32> to vector<8x128xf32>
    %97 = arith.addf %95, %96 : vector<8x128xf32>
    %98 = arith.negf %97 : vector<8x128xf32>
    %99 = math.exp %98 : vector<8x128xf32>
    %cst_27 = arith.constant 1.000000e+00 : f32
    %100 = vector.broadcast %cst_27 : f32 to vector<8x128xf32>
    %101 = arith.addf %100, %99 : vector<8x128xf32>
    %102 = arith.divf %100, %101 : vector<8x128xf32>
    %103 = vector.extract_strided_slice %93 {offsets = [0, 128], sizes = [8, 128], strides = [1, 1]} : vector<8x384xf32> to vector<8x128xf32>
    %104 = vector.extract_strided_slice %94 {offsets = [0, 128], sizes = [8, 128], strides = [1, 1]} : vector<8x384xf32> to vector<8x128xf32>
    %105 = arith.addf %103, %104 : vector<8x128xf32>
    %106 = arith.negf %105 : vector<8x128xf32>
    %107 = math.exp %106 : vector<8x128xf32>
    %cst_28 = arith.constant 1.000000e+00 : f32
    %108 = vector.broadcast %cst_28 : f32 to vector<8x128xf32>
    %109 = arith.addf %108, %107 : vector<8x128xf32>
    %110 = arith.divf %108, %109 : vector<8x128xf32>
    %111 = vector.extract_strided_slice %93 {offsets = [0, 256], sizes = [8, 128], strides = [1, 1]} : vector<8x384xf32> to vector<8x128xf32>
    %112 = vector.extract_strided_slice %94 {offsets = [0, 256], sizes = [8, 128], strides = [1, 1]} : vector<8x384xf32> to vector<8x128xf32>
    %113 = arith.addf %112, %10 : vector<8x128xf32>
    %114 = arith.mulf %102, %113 : vector<8x128xf32>
    %115 = arith.addf %111, %114 : vector<8x128xf32>
    %116 = math.tanh %115 : vector<8x128xf32>
    %117 = arith.subf %92, %116 : vector<8x128xf32>
    %118 = arith.mulf %110, %117 : vector<8x128xf32>
    %119 = arith.addf %116, %118 : vector<8x128xf32>
    %c32 = arith.constant 32 : index
    %c0_29 = arith.constant 0 : index
    %120 = vector.load %arg9[%c32, %c0_29] : memref<64x384xf32, #tpu.memory_space<vmem>>, vector<8x384xf32>
    %cst_30 = arith.constant dense<0.000000e+00> : vector<8x384xf32>
    %121 = tpu.matmul %119, %7, %cst_30 {dimension_numbers = #tpu.dot_dimension_numbers<[1], [0], [0], [1], [0, 0, 1, 1], [], []>} : vector<8x128xf32>, vector<128x384xf32>, vector<8x384xf32> -> vector<8x384xf32>
    %122 = vector.extract_strided_slice %120 {offsets = [0, 0], sizes = [8, 128], strides = [1, 1]} : vector<8x384xf32> to vector<8x128xf32>
    %123 = vector.extract_strided_slice %121 {offsets = [0, 0], sizes = [8, 128], strides = [1, 1]} : vector<8x384xf32> to vector<8x128xf32>
    %124 = arith.addf %122, %123 : vector<8x128xf32>
    %125 = arith.negf %124 : vector<8x128xf32>
    %126 = math.exp %125 : vector<8x128xf32>
    %cst_31 = arith.constant 1.000000e+00 : f32
    %127 = vector.broadcast %cst_31 : f32 to vector<8x128xf32>
    %128 = arith.addf %127, %126 : vector<8x128xf32>
    %129 = arith.divf %127, %128 : vector<8x128xf32>
    %130 = vector.extract_strided_slice %120 {offsets = [0, 128], sizes = [8, 128], strides = [1, 1]} : vector<8x384xf32> to vector<8x128xf32>
    %131 = vector.extract_strided_slice %121 {offsets = [0, 128], sizes = [8, 128], strides = [1, 1]} : vector<8x384xf32> to vector<8x128xf32>
    %132 = arith.addf %130, %131 : vector<8x128xf32>
    %133 = arith.negf %132 : vector<8x128xf32>
    %134 = math.exp %133 : vector<8x128xf32>
    %cst_32 = arith.constant 1.000000e+00 : f32
    %135 = vector.broadcast %cst_32 : f32 to vector<8x128xf32>
    %136 = arith.addf %135, %134 : vector<8x128xf32>
    %137 = arith.divf %135, %136 : vector<8x128xf32>
    %138 = vector.extract_strided_slice %120 {offsets = [0, 256], sizes = [8, 128], strides = [1, 1]} : vector<8x384xf32> to vector<8x128xf32>
    %139 = vector.extract_strided_slice %121 {offsets = [0, 256], sizes = [8, 128], strides = [1, 1]} : vector<8x384xf32> to vector<8x128xf32>
    %140 = arith.addf %139, %10 : vector<8x128xf32>
    %141 = arith.mulf %129, %140 : vector<8x128xf32>
    %142 = arith.addf %138, %141 : vector<8x128xf32>
    %143 = math.tanh %142 : vector<8x128xf32>
    %144 = arith.subf %119, %143 : vector<8x128xf32>
    %145 = arith.mulf %137, %144 : vector<8x128xf32>
    %146 = arith.addf %143, %145 : vector<8x128xf32>
    %c40 = arith.constant 40 : index
    %c0_33 = arith.constant 0 : index
    %147 = vector.load %arg9[%c40, %c0_33] : memref<64x384xf32, #tpu.memory_space<vmem>>, vector<8x384xf32>
    %cst_34 = arith.constant dense<0.000000e+00> : vector<8x384xf32>
    %148 = tpu.matmul %146, %7, %cst_34 {dimension_numbers = #tpu.dot_dimension_numbers<[1], [0], [0], [1], [0, 0, 1, 1], [], []>} : vector<8x128xf32>, vector<128x384xf32>, vector<8x384xf32> -> vector<8x384xf32>
    %149 = vector.extract_strided_slice %147 {offsets = [0, 0], sizes = [8, 128], strides = [1, 1]} : vector<8x384xf32> to vector<8x128xf32>
    %150 = vector.extract_strided_slice %148 {offsets = [0, 0], sizes = [8, 128], strides = [1, 1]} : vector<8x384xf32> to vector<8x128xf32>
    %151 = arith.addf %149, %150 : vector<8x128xf32>
    %152 = arith.negf %151 : vector<8x128xf32>
    %153 = math.exp %152 : vector<8x128xf32>
    %cst_35 = arith.constant 1.000000e+00 : f32
    %154 = vector.broadcast %cst_35 : f32 to vector<8x128xf32>
    %155 = arith.addf %154, %153 : vector<8x128xf32>
    %156 = arith.divf %154, %155 : vector<8x128xf32>
    %157 = vector.extract_strided_slice %147 {offsets = [0, 128], sizes = [8, 128], strides = [1, 1]} : vector<8x384xf32> to vector<8x128xf32>
    %158 = vector.extract_strided_slice %148 {offsets = [0, 128], sizes = [8, 128], strides = [1, 1]} : vector<8x384xf32> to vector<8x128xf32>
    %159 = arith.addf %157, %158 : vector<8x128xf32>
    %160 = arith.negf %159 : vector<8x128xf32>
    %161 = math.exp %160 : vector<8x128xf32>
    %cst_36 = arith.constant 1.000000e+00 : f32
    %162 = vector.broadcast %cst_36 : f32 to vector<8x128xf32>
    %163 = arith.addf %162, %161 : vector<8x128xf32>
    %164 = arith.divf %162, %163 : vector<8x128xf32>
    %165 = vector.extract_strided_slice %147 {offsets = [0, 256], sizes = [8, 128], strides = [1, 1]} : vector<8x384xf32> to vector<8x128xf32>
    %166 = vector.extract_strided_slice %148 {offsets = [0, 256], sizes = [8, 128], strides = [1, 1]} : vector<8x384xf32> to vector<8x128xf32>
    %167 = arith.addf %166, %10 : vector<8x128xf32>
    %168 = arith.mulf %156, %167 : vector<8x128xf32>
    %169 = arith.addf %165, %168 : vector<8x128xf32>
    %170 = math.tanh %169 : vector<8x128xf32>
    %171 = arith.subf %146, %170 : vector<8x128xf32>
    %172 = arith.mulf %164, %171 : vector<8x128xf32>
    %173 = arith.addf %170, %172 : vector<8x128xf32>
    %c48 = arith.constant 48 : index
    %c0_37 = arith.constant 0 : index
    %174 = vector.load %arg9[%c48, %c0_37] : memref<64x384xf32, #tpu.memory_space<vmem>>, vector<8x384xf32>
    %cst_38 = arith.constant dense<0.000000e+00> : vector<8x384xf32>
    %175 = tpu.matmul %173, %7, %cst_38 {dimension_numbers = #tpu.dot_dimension_numbers<[1], [0], [0], [1], [0, 0, 1, 1], [], []>} : vector<8x128xf32>, vector<128x384xf32>, vector<8x384xf32> -> vector<8x384xf32>
    %176 = vector.extract_strided_slice %174 {offsets = [0, 0], sizes = [8, 128], strides = [1, 1]} : vector<8x384xf32> to vector<8x128xf32>
    %177 = vector.extract_strided_slice %175 {offsets = [0, 0], sizes = [8, 128], strides = [1, 1]} : vector<8x384xf32> to vector<8x128xf32>
    %178 = arith.addf %176, %177 : vector<8x128xf32>
    %179 = arith.negf %178 : vector<8x128xf32>
    %180 = math.exp %179 : vector<8x128xf32>
    %cst_39 = arith.constant 1.000000e+00 : f32
    %181 = vector.broadcast %cst_39 : f32 to vector<8x128xf32>
    %182 = arith.addf %181, %180 : vector<8x128xf32>
    %183 = arith.divf %181, %182 : vector<8x128xf32>
    %184 = vector.extract_strided_slice %174 {offsets = [0, 128], sizes = [8, 128], strides = [1, 1]} : vector<8x384xf32> to vector<8x128xf32>
    %185 = vector.extract_strided_slice %175 {offsets = [0, 128], sizes = [8, 128], strides = [1, 1]} : vector<8x384xf32> to vector<8x128xf32>
    %186 = arith.addf %184, %185 : vector<8x128xf32>
    %187 = arith.negf %186 : vector<8x128xf32>
    %188 = math.exp %187 : vector<8x128xf32>
    %cst_40 = arith.constant 1.000000e+00 : f32
    %189 = vector.broadcast %cst_40 : f32 to vector<8x128xf32>
    %190 = arith.addf %189, %188 : vector<8x128xf32>
    %191 = arith.divf %189, %190 : vector<8x128xf32>
    %192 = vector.extract_strided_slice %174 {offsets = [0, 256], sizes = [8, 128], strides = [1, 1]} : vector<8x384xf32> to vector<8x128xf32>
    %193 = vector.extract_strided_slice %175 {offsets = [0, 256], sizes = [8, 128], strides = [1, 1]} : vector<8x384xf32> to vector<8x128xf32>
    %194 = arith.addf %193, %10 : vector<8x128xf32>
    %195 = arith.mulf %183, %194 : vector<8x128xf32>
    %196 = arith.addf %192, %195 : vector<8x128xf32>
    %197 = math.tanh %196 : vector<8x128xf32>
    %198 = arith.subf %173, %197 : vector<8x128xf32>
    %199 = arith.mulf %191, %198 : vector<8x128xf32>
    %200 = arith.addf %197, %199 : vector<8x128xf32>
    %c56 = arith.constant 56 : index
    %c0_41 = arith.constant 0 : index
    %201 = vector.load %arg9[%c56, %c0_41] : memref<64x384xf32, #tpu.memory_space<vmem>>, vector<8x384xf32>
    %cst_42 = arith.constant dense<0.000000e+00> : vector<8x384xf32>
    %202 = tpu.matmul %200, %7, %cst_42 {dimension_numbers = #tpu.dot_dimension_numbers<[1], [0], [0], [1], [0, 0, 1, 1], [], []>} : vector<8x128xf32>, vector<128x384xf32>, vector<8x384xf32> -> vector<8x384xf32>
    %203 = vector.extract_strided_slice %201 {offsets = [0, 0], sizes = [8, 128], strides = [1, 1]} : vector<8x384xf32> to vector<8x128xf32>
    %204 = vector.extract_strided_slice %202 {offsets = [0, 0], sizes = [8, 128], strides = [1, 1]} : vector<8x384xf32> to vector<8x128xf32>
    %205 = arith.addf %203, %204 : vector<8x128xf32>
    %206 = arith.negf %205 : vector<8x128xf32>
    %207 = math.exp %206 : vector<8x128xf32>
    %cst_43 = arith.constant 1.000000e+00 : f32
    %208 = vector.broadcast %cst_43 : f32 to vector<8x128xf32>
    %209 = arith.addf %208, %207 : vector<8x128xf32>
    %210 = arith.divf %208, %209 : vector<8x128xf32>
    %211 = vector.extract_strided_slice %201 {offsets = [0, 128], sizes = [8, 128], strides = [1, 1]} : vector<8x384xf32> to vector<8x128xf32>
    %212 = vector.extract_strided_slice %202 {offsets = [0, 128], sizes = [8, 128], strides = [1, 1]} : vector<8x384xf32> to vector<8x128xf32>
    %213 = arith.addf %211, %212 : vector<8x128xf32>
    %214 = arith.negf %213 : vector<8x128xf32>
    %215 = math.exp %214 : vector<8x128xf32>
    %cst_44 = arith.constant 1.000000e+00 : f32
    %216 = vector.broadcast %cst_44 : f32 to vector<8x128xf32>
    %217 = arith.addf %216, %215 : vector<8x128xf32>
    %218 = arith.divf %216, %217 : vector<8x128xf32>
    %219 = vector.extract_strided_slice %201 {offsets = [0, 256], sizes = [8, 128], strides = [1, 1]} : vector<8x384xf32> to vector<8x128xf32>
    %220 = vector.extract_strided_slice %202 {offsets = [0, 256], sizes = [8, 128], strides = [1, 1]} : vector<8x384xf32> to vector<8x128xf32>
    %221 = arith.addf %220, %10 : vector<8x128xf32>
    %222 = arith.mulf %210, %221 : vector<8x128xf32>
    %223 = arith.addf %219, %222 : vector<8x128xf32>
    %224 = math.tanh %223 : vector<8x128xf32>
    %225 = arith.subf %200, %224 : vector<8x128xf32>
    %226 = arith.mulf %218, %225 : vector<8x128xf32>
    %227 = arith.addf %224, %226 : vector<8x128xf32>
    %c0_45 = arith.constant 0 : index
    %c0_46 = arith.constant 0 : index
    %228 = vector.load %arg6[%c0_45, %c0_46] : memref<128x128xf32, #tpu.memory_space<vmem>>, vector<128x128xf32>
    %cst_47 = arith.constant dense<0.000000e+00> : vector<8x128xf32>
    %229 = tpu.matmul %227, %228, %cst_47 {dimension_numbers = #tpu.dot_dimension_numbers<[1], [0], [0], [1], [0, 0, 1, 1], [], []>} : vector<8x128xf32>, vector<128x128xf32>, vector<8x128xf32> -> vector<8x128xf32>
    %c0_48 = arith.constant 0 : index
    %c0_49 = arith.constant 0 : index
    %230 = vector.load %arg7[%c0_48, %c0_49] : memref<1x128xf32, #tpu.memory_space<vmem>>, vector<1x128xf32>
    %231 = vector.broadcast %230 : vector<1x128xf32> to vector<8x128xf32>
    %232 = arith.addf %229, %231 : vector<8x128xf32>
    %c0_50 = arith.constant 0 : index
    %c0_51 = arith.constant 0 : index
    %233 = vector.load %arg8[%c0_50, %c0_51] : memref<8x128xf32, #tpu.memory_space<vmem>>, vector<8x128xf32>
    tpu.vector_store %arg8[%c0_50, %c0_51], %232 {strides = array<i32>} : memref<8x128xf32, #tpu.memory_space<vmem>>, vector<8x128xf32>,
    return
  }
  func.func @transform_0(%arg0: i32) -> (i32, i32) {
    %c0_i32 = arith.constant 0 : i32
    %c0_i32_0 = arith.constant 0 : i32
    %c0_i32_1 = arith.constant 0 : i32
    return %c0_i32, %c0_i32_0 : i32, i32
  }
  func.func @transform_1(%arg0: i32) -> (i32, i32) {
    %c0_i32 = arith.constant 0 : i32
    %c0_i32_0 = arith.constant 0 : i32
    %c0_i32_1 = arith.constant 0 : i32
    return %c0_i32, %c0_i32_0 : i32, i32
  }
  func.func @transform_2(%arg0: i32) -> (i32, i32) {
    %c0_i32 = arith.constant 0 : i32
    %c0_i32_0 = arith.constant 0 : i32
    %c0_i32_1 = arith.constant 0 : i32
    return %c0_i32, %c0_i32_0 : i32, i32
  }
  func.func @transform_3(%arg0: i32) -> (i32, i32) {
    %c0_i32 = arith.constant 0 : i32
    %c0_i32_0 = arith.constant 0 : i32
    %c0_i32_1 = arith.constant 0 : i32
    return %c0_i32, %c0_i32_0 : i32, i32
  }
  func.func @transform_4(%arg0: i32) -> (i32, i32) {
    %c0_i32 = arith.constant 0 : i32
    %c0_i32_0 = arith.constant 0 : i32
    %c0_i32_1 = arith.constant 0 : i32
    return %c0_i32, %c0_i32_0 : i32, i32
  }
  func.func @transform_5(%arg0: i32) -> (i32, i32) {
    %c0_i32 = arith.constant 0 : i32
    %c0_i32_0 = arith.constant 0 : i32
    %c0_i32_1 = arith.constant 0 : i32
    return %c0_i32, %c0_i32_0 : i32, i32
  }
  func.func @transform_6(%arg0: i32) -> (i32, i32) {
    %c0_i32 = arith.constant 0 : i32
    %c0_i32_0 = arith.constant 0 : i32
    %c0_i32_1 = arith.constant 0 : i32
    return %c0_i32, %c0_i32_0 : i32, i32
  }
  func.func @transform_7(%arg0: i32) -> (i32, i32) {
    %c0_i32 = arith.constant 0 : i32
    %c0_i32_0 = arith.constant 0 : i32
    %c0_i32_1 = arith.constant 0 : i32
    return %c0_i32, %c0_i32_0 : i32, i32
  }
}

</mosaic_0001>

<bundles_post_ra>
// kernel: gru_network_forward.1
= control target key start
LH: loop header
LB: loop body
LE: loop exit
PB: predicated region body
PF: predicated region fallthrough
CT: control target
= control target key end

     0   :  { %vm77_vm0 = vcmask 1043456   ;;  %vm52_vm1 = vcmask 31744   ;;  %v1383_v34 = vmov 0.0   ;;  %s2531_s4 = inlined_call_operand.vmem [shape: f32[128,384], index: 4, kind: input, shape index: {}]   ;;  %s2532_s1 = inlined_call_operand.vmem [shape: f32[4,384], index: 1, kind: input, shape index: {}]   ;;  %s2533_s0 = inlined_call_operand.vmem [shape: f32[64,4], index: 0, kind: input, shape index: {}]   ;;  %s2534_s3 = inlined_call_operand.vmem [shape: f32[1,128], index: 3, kind: input, shape index: {}]   ;;  %s2535_s2 = inlined_call_operand.vmem [shape: f32[1,384], index: 2, kind: input, shape index: {}]   ;;  %s2536_s6 = inlined_call_operand.vmem [shape: f32[1,128], index: 6, kind: input, shape index: {}]   ;;  %s2537_s5 = inlined_call_operand.vmem [shape: f32[128,128], index: 5, kind: input, shape index: {}]   ;;  %s2538_s7 = inlined_call_operand.vmem [shape: f32[8,128], index: 7, kind: output, shape index: {}]  }
   0x1   :  { %v1427_v0 = vld [vmem:[%s2531_s4 + $0x168] sm:$0xff]  ;;  %v1432_v1 = vld [vmem:[%s2531_s4 + $0x150] sm:$0xff]  ;;  %v34_v2 = vld [vmem:[%s2532_s1] sm:$0xff] }
   0x2   :  { %286 = vmatpush.msra.mxu3 %v1427_v0  ;;  %v1441_v3 = vld [vmem:[%s2531_s4 + $0x138] sm:$0xff]  ;;  %46 = vst [vmem:[#allocation1] ss:$2 sm:$0xff] %v34_v2  ;;  %v1447_v4 = vld [vmem:[%s2531_s4 + $0x120] sm:$0xff]  ;;  %v1453_v5 = vld [vmem:[%s2531_s4 + $0x108] sm:$0xff] }
   0x3   :  { %v1459_v6 = vld [vmem:[%s2533_s0] sm:$0xff]  ;;  %v1464_v7 = vld [vmem:[%s2531_s4 + $0xf0] sm:$0xff]  ;;  %v1470_v9 = vld [vmem:[%s2531_s4 + $0x178] sm:$0xff] }
   0x4   :  { %287 = vmatpush.msra.mxu3 %v1432_v1  ;;  %v1476_v10 = vld [vmem:[%s2531_s4 + $0xd8] sm:$0xff]  ;;  %v1484_v11 = vld [vmem:[%s2531_s4 + $0x160] sm:$0xff]  ;;  %v1496_v13 = vld [vmem:[%s2531_s4 + $0x148] sm:$0xff] }
   0x5   :  { %v1489_v12 = vld [vmem:[%s2531_s4 + $0xc0] sm:$0xff]  ;;  %v1501_v14 = vld [vmem:[%s2531_s4 + $0xa8] sm:$0xff]  ;;  %v1508_v15 = vld [vmem:[%s2531_s4 + $0x130] sm:$0xff] }
   0x6   :  { %288 = vmatpush.msra.mxu3 %v1441_v3  ;;  %v1513_v16 = vld [vmem:[%s2533_s0 + $0x8] sm:$0xff]  ;;  %v1518_v17 = vld [vmem:[%s2531_s4 + $0x90] sm:$0xff]  ;;  %v1525_v18 = vld [vmem:[%s2531_s4 + $0x118] sm:$0xff] }
   0x7   :  { %v1530_v19 = vld [vmem:[%s2531_s4 + $0x78] sm:$0xff]  ;;  %v1539_v20 = vld [vmem:[%s2531_s4 + $0x100] sm:$0xff]  ;;  %v1551_v22 = vld [vmem:[%s2531_s4 + $0xe8] sm:$0xff] }
   0x8   :  { %289 = vmatpush.msra.mxu3 %v1447_v4  ;;  %v1544_v21 = vld [vmem:[%s2531_s4 + $0x60] sm:$0xff]  ;;  %v1556_v23 = vld [vmem:[%s2531_s4 + $0x48] sm:$0xff]  ;;  %v1563_v24 = vld [vmem:[%s2531_s4 + $0xd0] sm:$0xff] }
   0x9   :  { %v49_v8 = vld.sshfl [vmem:[#allocation1] sm:$0xff pattern:$0x75316420]  ;;  %v1568_v25 = vld [vmem:[%s2533_s0 + $0x10] sm:$0xff]  ;;  %v1580_v27 = vld [vmem:[%s2531_s4 + $0xb8] sm:$0xff] }
   0xa   :  { %290 = vmatpush.msra.mxu3 %v1453_v5  ;;  %1208 = vmatpush.msk.msra.mxu0 %vm77_vm0, %v49_v8  ;;  %v1573_v26 = vld [vmem:[%s2531_s4 + $0x30] sm:$0xff]  ;;  %v1585_v28 = vld [vmem:[%s2531_s4 + $0x18] sm:$0xff]  ;;  %v1594_v29 = vld [vmem:[%s2531_s4 + $0xa0] sm:$0xff] }
   0xb   :  { %1209 = vmatmul.msk.f32.vlgmr.msra.gmra.mxu0 %vm52_vm1, %v1459_v6  ;;  %2556 = vst [vmem:[#allocation3_spill] sm:$0xff] %v1573_v26  ;;  %v1599_v30 = vld [vmem:[%s2531_s4] sm:$0xff]  ;;  %v1606_v31 = vld [vmem:[%s2531_s4 + $0x88] sm:$0xff]  ;;  %v1614_v33 = vld [vmem:[%s2531_s4 + $0x170] sm:$0xff] }
   0xc   :  { %291 = vmatpush.msra.mxu3 %v1464_v7  ;;  %326 = vmatpush.msrb.mxu0 %v1470_v9  ;;  %2557 = vst [vmem:[#allocation4_spill] sm:$0xff] %v1585_v28  ;;  %v35_v32 = vld [vmem:[%s2532_s1 + $0x8] sm:$0xf]  ;;  %v1622_v35 = vld [vmem:[%s2533_s0 + $0x18] sm:$0xff]  ;;  %v1633_v37 = vld [vmem:[%s2531_s4 + $0x70] sm:$0xff] }
   0xd   :  { %2558 = vst [vmem:[#allocation5_spill] sm:$0xff] %v1599_v30  ;;  %v1627_v36 = vld [vmem:[%s2531_s4 + $0x158] sm:$0xff]  ;;  %v1639_v38 = vld [vmem:[%s2531_s4 + $0x140] sm:$0xff]  ;;  %v50_v39 = vld.sshfl [vmem:[#allocation1 + $0x8] sm:$0xff pattern:$0x75316420] }
   0xe   :  { %292 = vmatpush.msra.mxu3 %v1476_v10  ;;  %327 = vmatpush.msrb.mxu0 %v1484_v11  ;;  %48 = vst [vmem:[#allocation1 + $0x10] ss:$2 sm:$0xff] %v35_v32  ;;  %v1648_v40 = vld [vmem:[%s2531_s4 + $0x58] sm:$0xff]  ;;  %v1653_v41 = vld [vmem:[%s2531_s4 + $0x40] sm:$0xff]  ;;  %v1658_v42 = vld [vmem:[%s2531_s4 + $0x128] sm:$0xff] }
   0xf   :  { %2559 = vst [vmem:[#allocation6_spill] sm:$0xff] %v1653_v41  ;;  %1217 = vmatpush.msk.msra.mxu1 %vm77_vm0, %v50_v39  ;;  %v1668_v44 = vld [vmem:[%s2531_s4 + $0x28] sm:$0xff]  ;;  %v1673_v45 = vld [vmem:[%s2531_s4 + $0x110] sm:$0xff]  ;;  %v1688_v47 = vld [vmem:[%s2533_s0 + $0x20] sm:$0xff] }
  0x10   :  { %293 = vmatpush.msra.mxu3 %v1489_v12  ;;  %328 = vmatpush.msrb.mxu0 %v1496_v13  ;;  %2560 = vst [vmem:[#allocation7_spill] sm:$0xff] %v1668_v44  ;;  %v1683_v46 = vld [vmem:[%s2531_s4 + $0x10] sm:$0xff]  ;;  %v1693_v48 = vld [vmem:[%s2531_s4 + $0xf8] sm:$0xff]  ;;  %v1702_v49 = vld [vmem:[%s2531_s4 + $0xe0] sm:$0xff] }
  0x11   :  { %1218 = vmatmul.msk.f32.vlgmr.msra.gmra.mxu1 %vm52_vm1, %v1459_v6  ;;  %2561 = vst [vmem:[#allocation8_spill] sm:$0xff] %v1683_v46  ;;  %v1712_v50 = vld [vmem:[%s2531_s4 + $0xc8] sm:$0xff]  ;;  %v1722_v51 = vld [vmem:[%s2531_s4 + $0xb0] sm:$0xff]  ;;  %v1737_v53 = vld [vmem:[%s2531_s4 + $0x98] sm:$0xff] }
  0x12   :  { %294 = vmatpush.msra.mxu3 %v1501_v14  ;;  %329 = vmatpush.msrb.mxu0 %v1508_v15  ;;  %v1732_v52 = vld [vmem:[%s2533_s0 + $0x28] sm:$0xff]  ;;  %v1746_v54 = vld [vmem:[%s2531_s4 + $0x80] sm:$0xff]  ;;  %v1766_v56 = vld [vmem:[%s2531_s4 + $0x50] sm:$0xff] }
  0x13   :  { %1210 = vmatmul.msk.f32.gmra.mxu0 %vm52_vm1, %v1513_v16  ;;  %396 = vmatpush.msrb.mxu1 %v1427_v0  ;;  %v1756_v55 = vld [vmem:[%s2531_s4 + $0x68] sm:$0xff]  ;;  %v1776_v57 = vld [vmem:[%s2533_s0 + $0x30] sm:$0xff]  ;;  %v1781_v58 = vld [vmem:[%s2531_s4 + $0x38] sm:$0xff] }
  0x14   :  { %295 = vmatpush.msra.mxu3 %v1518_v17  ;;  %330 = vmatpush.msrb.mxu0 %v1525_v18  ;;  %2562 = vst [vmem:[#allocation9_spill] sm:$0xff] %v1781_v58  ;;  %v1790_v59 = vld [vmem:[%s2531_s4 + $0x20] sm:$0xff]  ;;  %v1800_v60 = vld [vmem:[%s2531_s4 + $0x8] sm:$0xff]  ;;  %v1816_v61 = vld [vmem:[%s2533_s0 + $0x38] sm:$0xff] }
  0x15   :  { %v51_v43 = vld.sshfl [vmem:[#allocation1 + $0x10] sm:$0xff pattern:$0x75316420]  ;;  %397 = vmatpush.msrb.mxu1 %v1432_v1  ;;  %2563 = vst [vmem:[#allocation10_spill] sm:$0xff] %v1790_v59  ;;  %v36_v63 = vld [vmem:[%s2535_s2] sm:$0x7] }
  0x16   :  { %296 = vmatpush.msra.mxu3 %v1530_v19  ;;  %331 = vmatpush.msrb.mxu0 %v1539_v20  ;;  %2564 = vst [vmem:[#allocation11_spill] sm:$0xff] %v1800_v60  ;;  %v38_v2 = vperm.slane %v36_v63, 0 }
  0x17   :  { %1226 = vmatpush.msk.msra.mxu2 %vm77_vm0, %v51_v43  ;;  %398 = vmatpush.msrb.mxu1 %v1441_v3 }
  0x18   :  { %297 = vmatpush.msra.mxu3 %v1544_v21  ;;  %332 = vmatpush.msrb.mxu0 %v1551_v22 }
  0x19   :  { %1227 = vmatmul.msk.f32.vlgmr.msra.gmra.mxu2 %vm52_vm1, %v1459_v6  ;;  %1219 = vmatmul.msk.f32.gmra.mxu1 %vm52_vm1, %v1513_v16 }
  0x1a   :  { %298 = vmatpush.msra.mxu3 %v1556_v23  ;;  %333 = vmatpush.msrb.mxu0 %v1563_v24 }
  0x1b   :  { %1211 = vmatmul.msk.f32.gmra.mxu0 %vm52_vm1, %v1568_v25  ;;  %416 = vmatpush.msrb.mxu2 %v1614_v33 }
  0x1c   :  { %299 = vmatpush.msra.mxu3 %v1573_v26  ;;  %334 = vmatpush.msrb.mxu0 %v1580_v27 }
  0x1d   :  { %417 = vmatpush.msrb.mxu2 %v1627_v36  ;;  %399 = vmatpush.msrb.mxu1 %v1447_v4 }
  0x1e   :  { %300 = vmatpush.msra.mxu3 %v1585_v28  ;;  %335 = vmatpush.msrb.mxu0 %v1594_v29 }
  0x1f   :  { %418 = vmatpush.msrb.mxu2 %v1639_v38  ;;  %400 = vmatpush.msrb.mxu1 %v1453_v5 }
  0x20   :  { %301 = vmatpush.msra.mxu3 %v1599_v30  ;;  %336 = vmatpush.msrb.mxu0 %v1606_v31 }
  0x21   :  { %302 = vmatmul.f32.vlgmr.msra.gmra.mxu3 %v1383_v34  ;;  %1228 = vmatmul.msk.f32.gmra.mxu2 %vm52_vm1, %v1513_v16 }
  0x22   :  { %306 = vmatpush.msrb.mxu3 %v1614_v33  ;;  %337 = vmatpush.msrb.mxu0 %v1633_v37 }
  0x23   :  { %1212 = vmatmul.msk.f32.gmra.mxu0 %vm52_vm1, %v1622_v35  ;;  %419 = vmatpush.msrb.mxu2 %v1658_v42 }
  0x24   :  { %307 = vmatpush.msrb.mxu3 %v1627_v36  ;;  %338 = vmatpush.msrb.mxu0 %v1648_v40 }
  0x25   :  { %401 = vmatpush.msrb.mxu1 %v1464_v7  ;;  %420 = vmatpush.msrb.mxu2 %v1673_v45 }
  0x26   :  { %308 = vmatpush.msrb.mxu3 %v1639_v38  ;;  %339 = vmatpush.msrb.mxu0 %v1653_v41 }
  0x27   :  { %402 = vmatpush.msrb.mxu1 %v1476_v10  ;;  %421 = vmatpush.msrb.mxu2 %v1693_v48 }
  0x28   :  { %309 = vmatpush.msrb.mxu3 %v1658_v42  ;;  %340 = vmatpush.msrb.mxu0 %v1668_v44 }
  0x29   :  { %1220 = vmatmul.msk.f32.gmra.mxu1 %vm52_vm1, %v1568_v25  ;;  %422 = vmatpush.msrb.mxu2 %v1702_v49 }
  0x2a   :  { %310 = vmatpush.msrb.mxu3 %v1673_v45  ;;  %341 = vmatpush.msrb.mxu0 %v1683_v46 }
  0x2b   :  { %1213 = vmatmul.msk.f32.gmra.mxu0 %vm52_vm1, %v1688_v47  ;;  %403 = vmatpush.msrb.mxu1 %v1489_v12 }
  0x2c   :  { %311 = vmatpush.msrb.mxu3 %v1693_v48  ;;  %506 = vmatpush.msra.mxu0 %v1427_v0 }
  0x2d   :  { %1229 = vmatmul.msk.f32.gmra.mxu2 %vm52_vm1, %v1568_v25  ;;  %404 = vmatpush.msrb.mxu1 %v1501_v14 }
  0x2e   :  { %312 = vmatpush.msrb.mxu3 %v1702_v49  ;;  %423 = vmatpush.msrb.mxu2 %v1712_v50 }
  0x2f   :  { %507 = vmatpush.msra.mxu0 %v1432_v1  ;;  %405 = vmatpush.msrb.mxu1 %v1518_v17 }
  0x30   :  { %313 = vmatpush.msrb.mxu3 %v1712_v50  ;;  %424 = vmatpush.msrb.mxu2 %v1722_v51 }
  0x31   :  { %406 = vmatpush.msrb.mxu1 %v1530_v19  ;;  %508 = vmatpush.msra.mxu0 %v1441_v3 }
  0x32   :  { %314 = vmatpush.msrb.mxu3 %v1722_v51  ;;  %425 = vmatpush.msrb.mxu2 %v1737_v53 }
  0x33   :  { %1214 = vmatmul.msk.f32.gmra.mxu0 %vm52_vm1, %v1732_v52  ;;  %1221 = vmatmul.msk.f32.gmra.mxu1 %vm52_vm1, %v1622_v35 }
  0x34   :  { %315 = vmatpush.msrb.mxu3 %v1737_v53  ;;  %407 = vmatpush.msrb.mxu1 %v1544_v21 }
  0x35   :  { %426 = vmatpush.msrb.mxu2 %v1746_v54  ;;  %509 = vmatpush.msra.mxu0 %v1447_v4 }
  0x36   :  { %316 = vmatpush.msrb.mxu3 %v1746_v54  ;;  %1230 = vmatmul.msk.f32.gmra.mxu2 %vm52_vm1, %v1622_v35 }
  0x37   :  { %408 = vmatpush.msrb.mxu1 %v1556_v23  ;;  %427 = vmatpush.msrb.mxu2 %v1756_v55 }
  0x38   :  { %317 = vmatpush.msrb.mxu3 %v1756_v55  ;;  %510 = vmatpush.msra.mxu0 %v1453_v5 }
  0x39   :  { %409 = vmatpush.msrb.mxu1 %v1573_v26  ;;  %428 = vmatpush.msrb.mxu2 %v1766_v56 }
  0x3a   :  { %318 = vmatpush.msrb.mxu3 %v1766_v56  ;;  %511 = vmatpush.msra.mxu0 %v1464_v7 }
  0x3b   :  { %1215 = vmatmul.msk.f32.gmra.mxu0 %vm52_vm1, %v1776_v57  ;;  %410 = vmatpush.msrb.mxu1 %v1585_v28 }
  0x3c   :  { %319 = vmatpush.msrb.mxu3 %v1781_v58  ;;  %1222 = vmatmul.msk.f32.gmra.mxu1 %vm52_vm1, %v1688_v47 }
  0x3d   :  { %429 = vmatpush.msrb.mxu2 %v1781_v58  ;;  %411 = vmatpush.msrb.mxu1 %v1599_v30 }
  0x3e   :  { %320 = vmatpush.msrb.mxu3 %v1790_v59  ;;  %1231 = vmatmul.msk.f32.gmra.mxu2 %vm52_vm1, %v1688_v47 }
  0x3f   :  { %430 = vmatpush.msrb.mxu2 %v1790_v59  ;;  %526 = vmatpush.msra.mxu1 %v1614_v33 }
  0x40   :  { %321 = vmatpush.msrb.mxu3 %v1800_v60  ;;  %512 = vmatpush.msra.mxu0 %v1476_v10 }
  0x41   :  { %322 = vmatmul.f32.vlgmr.msrb.gmra.mxu3 %v1383_v34  ;;  %431 = vmatpush.msrb.mxu2 %v1800_v60 }
  0x42   :  { %436 = vmatpush.msra.mxu3 %v1470_v9  ;;  %527 = vmatpush.msra.mxu1 %v1627_v36 }
  0x43   :  { %1216 = vmatmul.msk.f32.gmra.mxu0 %vm52_vm1, %v1816_v61  ;;  %546 = vmatpush.msra.mxu2 %v1470_v9 }
  0x44   :  { %437 = vmatpush.msra.mxu3 %v1484_v11  ;;  %528 = vmatpush.msra.mxu1 %v1639_v38 }
  0x45   :  { %1223 = vmatmul.msk.f32.gmra.mxu1 %vm52_vm1, %v1732_v52  ;;  %547 = vmatpush.msra.mxu2 %v1484_v11 }
  0x46   :  { %438 = vmatpush.msra.mxu3 %v1496_v13  ;;  %529 = vmatpush.msra.mxu1 %v1658_v42 }
  0x47   :  { %1232 = vmatmul.msk.f32.gmra.mxu2 %vm52_vm1, %v1732_v52  ;;  %513 = vmatpush.msra.mxu0 %v1489_v12 }
  0x48   :  { %439 = vmatpush.msra.mxu3 %v1508_v15  ;;  %548 = vmatpush.msra.mxu2 %v1496_v13 }
  0x49   :  { %530 = vmatpush.msra.mxu1 %v1673_v45  ;;  %514 = vmatpush.msra.mxu0 %v1501_v14 }
  0x4a   :  { %440 = vmatpush.msra.mxu3 %v1525_v18  ;;  %549 = vmatpush.msra.mxu2 %v1508_v15 }
  0x4b   :  { %342 = vmatmul.f32.vlgmr.msrb.gmra.mxu0 %v1383_v34  ;;  %531 = vmatpush.msra.mxu1 %v1693_v48 }
  0x4c   :  { %441 = vmatpush.msra.mxu3 %v1539_v20  ;;  %550 = vmatpush.msra.mxu2 %v1525_v18 }
  0x4d   :  { %1224 = vmatmul.msk.f32.gmra.mxu1 %vm52_vm1, %v1776_v57  ;;  %515 = vmatpush.msra.mxu0 %v1518_v17 }
  0x4e   :  { %442 = vmatpush.msra.mxu3 %v1551_v22  ;;  %551 = vmatpush.msra.mxu2 %v1539_v20 }
  0x4f   :  { %532 = vmatpush.msra.mxu1 %v1702_v49  ;;  %1233 = vmatmul.msk.f32.gmra.mxu2 %vm52_vm1, %v1776_v57 }
  0x50   :  { %443 = vmatpush.msra.mxu3 %v1563_v24  ;;  %552 = vmatpush.msra.mxu2 %v1551_v22 }
  0x51   :  { %533 = vmatpush.msra.mxu1 %v1712_v50  ;;  %516 = vmatpush.msra.mxu0 %v1530_v19 }
  0x52   :  { %444 = vmatpush.msra.mxu3 %v1580_v27  ;;  %553 = vmatpush.msra.mxu2 %v1563_v24 }
  0x53   :  { %534 = vmatpush.msra.mxu1 %v1722_v51  ;;  %517 = vmatpush.msra.mxu0 %v1544_v21 }
  0x54   :  { %445 = vmatpush.msra.mxu3 %v1594_v29  ;;  %554 = vmatpush.msra.mxu2 %v1580_v27 }
  0x55   :  { %1225 = vmatmul.msk.f32.gmra.mxu1 %vm52_vm1, %v1816_v61  ;;  %518 = vmatpush.msra.mxu0 %v1556_v23 }
  0x56   :  { %446 = vmatpush.msra.mxu3 %v1606_v31  ;;  %535 = vmatpush.msra.mxu1 %v1737_v53 }
  0x57   :  { %555 = vmatpush.msra.mxu2 %v1594_v29  ;;  %519 = vmatpush.msra.mxu0 %v1573_v26 }
  0x58   :  { %447 = vmatpush.msra.mxu3 %v1633_v37  ;;  %1234 = vmatmul.msk.f32.gmra.mxu2 %vm52_vm1, %v1816_v61 }
  0x59   :  { %536 = vmatpush.msra.mxu1 %v1746_v54  ;;  %556 = vmatpush.msra.mxu2 %v1606_v31 }
  0x5a   :  { %448 = vmatpush.msra.mxu3 %v1648_v40  ;;  %520 = vmatpush.msra.mxu0 %v1585_v28 }
  0x5b   :  { %537 = vmatpush.msra.mxu1 %v1756_v55  ;;  %557 = vmatpush.msra.mxu2 %v1633_v37 }
  0x5c   :  { %449 = vmatpush.msra.mxu3 %v1653_v41  ;;  %521 = vmatpush.msra.mxu0 %v1599_v30 }
  0x5d   :  { %538 = vmatpush.msra.mxu1 %v1766_v56  ;;  %558 = vmatpush.msra.mxu2 %v1648_v40 }
  0x5e   :  { %450 = vmatpush.msra.mxu3 %v1668_v44  ;;  %636 = vmatpush.msrb.mxu0 %v1614_v33 }
  0x5f   :  { %539 = vmatpush.msra.mxu1 %v1781_v58  ;;  %559 = vmatpush.msra.mxu2 %v1653_v41 }
  0x60   :  { %451 = vmatpush.msra.mxu3 %v1683_v46  ;;  %637 = vmatpush.msrb.mxu0 %v1627_v36 }
  0x61   :  { %540 = vmatpush.msra.mxu1 %v1790_v59  ;;  %560 = vmatpush.msra.mxu2 %v1668_v44 }
  0x62   :  { %616 = vmatpush.msrb.mxu3 %v1427_v0  ;;  %638 = vmatpush.msrb.mxu0 %v1639_v38 }
  0x63   :  { %541 = vmatpush.msra.mxu1 %v1800_v60  ;;  %561 = vmatpush.msra.mxu2 %v1683_v46 }
  0x64   :  { %617 = vmatpush.msrb.mxu3 %v1432_v1  ;;  %639 = vmatpush.msrb.mxu0 %v1658_v42 }
  0x66   :  { %618 = vmatpush.msrb.mxu3 %v1441_v3  ;;  %640 = vmatpush.msrb.mxu0 %v1673_v45 }
  0x68   :  { %619 = vmatpush.msrb.mxu3 %v1447_v4  ;;  %641 = vmatpush.msrb.mxu0 %v1693_v48 }
  0x6a   :  { %620 = vmatpush.msrb.mxu3 %v1453_v5  ;;  %642 = vmatpush.msrb.mxu0 %v1702_v49 }
  0x6c   :  { %621 = vmatpush.msrb.mxu3 %v1464_v7  ;;  %643 = vmatpush.msrb.mxu0 %v1712_v50 }
  0x6e   :  { %622 = vmatpush.msrb.mxu3 %v1476_v10  ;;  %644 = vmatpush.msrb.mxu0 %v1722_v51 }
  0x70   :  { %623 = vmatpush.msrb.mxu3 %v1489_v12  ;;  %645 = vmatpush.msrb.mxu0 %v1737_v53 }
  0x72   :  { %624 = vmatpush.msrb.mxu3 %v1501_v14  ;;  %646 = vmatpush.msrb.mxu0 %v1746_v54 }
  0x74   :  { %625 = vmatpush.msrb.mxu3 %v1518_v17  ;;  %647 = vmatpush.msrb.mxu0 %v1756_v55 }
  0x76   :  { %626 = vmatpush.msrb.mxu3 %v1530_v19  ;;  %648 = vmatpush.msrb.mxu0 %v1766_v56 }
  0x78   :  { %627 = vmatpush.msrb.mxu3 %v1544_v21  ;;  %649 = vmatpush.msrb.mxu0 %v1781_v58 }
  0x7a   :  { %628 = vmatpush.msrb.mxu3 %v1556_v23  ;;  %650 = vmatpush.msrb.mxu0 %v1790_v59 }
  0x7c   :  { %629 = vmatpush.msrb.mxu3 %v1573_v26  ;;  %651 = vmatpush.msrb.mxu0 %v1800_v60 }
  0x7e   :  { %630 = vmatpush.msrb.mxu3 %v1585_v28 }
  0x80   :  { %631 = vmatpush.msrb.mxu3 %v1599_v30 }
  0x88   :  { %v101_v62 = vpop.f32.mrf.mxu0 }
  0x89   :  { %v102_v35 = vadd.f32 %v101_v62, %v38_v2 }
  0x8e   :  { %v142_v62 = vpop.f32.mrf.mxu1 }
  0x90   :  { %v104_v6 = vpop.f32.mrf.mxu0 }
  0x91   :  { %v1943_v8 = vadd.f32 %v104_v6, %v38_v2 }
  0x93   :  { %2565 = vst [vmem:[#allocation12_spill] sm:$0xff] %v1943_v8 }
  0x98   :  { %v107_v16 = vpop.f32.mrf.mxu0 }
  0x99   :  { %v1945_v25 = vadd.f32 %v107_v16, %v38_v2 }
  0x9b   :  { %2566 = vst [vmem:[#allocation13_spill] sm:$0xff] %v1945_v25 }
  0xa0   :  { %v110_v32 = vpop.f32.mrf.mxu0 }
  0xa1   :  { %v1947_v34 = vadd.f32 %v110_v32, %v38_v2 }
  0xa3   :  { %2567 = vst [vmem:[#allocation14_spill] sm:$0xff] %v1947_v34  ;;  %v1955_v34 = vperm.slane %v36_v63, 1 }
  0xa4   :  { %v303_v39 = vpop.f32.mrf.mxu3 }
  0xa5   :  { %v346_v43 = vadd.f32 %v303_v39, %v102_v35  ;;  %2571 = vst [vmem:[#allocation18_spill] sm:$0xff] %v1955_v34 }
  0xa7   :  { %v1235_v47 = vmul.f32 -1.442695, %v346_v43  ;;  %v143_v43 = vadd.f32 %v142_v62, %v1955_v34 }
  0xa8   :  { %v113_v52 = vpop.f32.mrf.mxu0 }
  0xa9   :  { %1254 = vpow2.f32 %v1235_v47  ;;  %v1949_v57 = vadd.f32 %v113_v52, %v38_v2 }
  0xab   :  { %2568 = vst [vmem:[#allocation15_spill] sm:$0xff] %v1949_v57 }
  0xaf   :  { %v1255_v61 = vpop.eup %1254 }
  0xb0   :  { %v350_v60 = vadd.f32 1.0, %v1255_v61  ;;  %v116_v30 = vpop.f32.mrf.mxu0 }
  0xb1   :  { %v1951_v46 = vadd.f32 %v116_v30, %v38_v2 }
  0xb2   :  { %1256 = vrcp.f32 %v350_v60  ;;  %v362_v8 = vand.u32 2147483648, %v350_v60  ;;  %vm356_vm3 = vweird.f32 %v350_v60 }
  0xb3   :  { %2569 = vst [vmem:[#allocation16_spill] sm:$0xff] %v1951_v46  ;;  %v1963_v46 = vld [vmem:[%s2534_s3] ss:$0 sm:$0xff] }
  0xb8   :  { %v1257_v6 = vpop.eup %1256  ;;  %v119_v16 = vpop.f32.mrf.mxu0 }
  0xb9   :  { %v1953_v25 = vadd.f32 %v119_v16, %v38_v2  ;;  %v352_v32 = vmul.f32 %v1257_v6, %v350_v60  ;;  %vm357_vm2 = vweird.f32 %v1257_v6 }
  0xba   :  { %vm358_vm4 = vmor %vm356_vm3, %vm357_vm2 }
  0xbb   :  { %2570 = vst [vmem:[#allocation17_spill] sm:$0xff] %v1953_v25  ;;  %v353_v35 = vsub.f32 1.0, %v352_v32  ;;  %v360_v32 = vand.u32 2147483647, %v350_v60 }
  0xbd   :  { %v354_v61 = vmul.f32 %v1257_v6, %v353_v35  ;;  %v363_v35 = vor.u32 1.1754944e-38, %v362_v8  ;;  %vm361_vm5 = vcmp.eq.f32.partialorder %v360_v32, 8.507059e+37 }
  0xbf   :  { %v355_v16 = vadd.f32 %v1257_v6, %v354_v61 }
  0xc0   :  { %v122_v39 = vpop.f32.mrf.mxu0 }
  0xc1   :  { %v1958_v47 = vadd.f32 %v122_v39, %v38_v2  ;;  %v359_v62 = vsel %vm358_vm4, %v1257_v6, %v355_v16  ;;  %v1966_v39 = vperm.slane %v36_v63, 2 }
  0xc3   :  { %2572 = vst [vmem:[#allocation19_spill] sm:$0xff] %v1958_v47 }
  0xc4   :  { %v323_v52 = vpop.f32.mrf.mxu3 }
  0xc5   :  { %v366_v57 = vadd.f32 %v323_v52, %v143_v43  ;;  %v364_v52 = vsel %vm361_vm5, %v363_v35, %v359_v62 }
  0xc7   :  { %v1236_v30 = vmul.f32 -1.442695, %v366_v57  ;;  %v183_v57 = vpop.f32.mrf.mxu2 }
  0xc8   :  { %v343_v25 = vpop.f32.mrf.mxu0  ;;  %v184_v61 = vadd.f32 %v183_v57, %v1966_v39 }
  0xc9   :  { %1258 = vpow2.f32 %v1236_v30  ;;  %v386_v2 = vadd.f32 %v1963_v46, %v343_v25 }
  0xcb   :  { %v387_v34 = vmul.f32 %v386_v2, %v364_v52  ;;  %v2577_v52 = vld [vmem:[#allocation11_spill] sm:$0xff] }
  0xcd   :  { %v388_v30 = vadd.f32 %v387_v34, %v184_v61  ;;  %v2575_v34 = vld [vmem:[#allocation8_spill] sm:$0xff]  ;;  %v145_v61 = vpop.f32.mrf.mxu1 }
  0xcf   :  { %v1259_v43 = vpop.eup %1258 }
  0xd0   :  { %v370_v47 = vadd.f32 1.0, %v1259_v43 }
  0xd2   :  { %1260 = vrcp.f32 %v370_v47  ;;  %v382_v6 = vand.u32 2147483648, %v370_v47  ;;  %v380_v63 = vand.u32 2147483647, %v370_v47  ;;  %vm376_vm7 = vweird.f32 %v370_v47 }
  0xd3   :  { %1262 = vtanh.f32 %v388_v30  ;;  %v186_v30 = vpop.f32.mrf.mxu2 }
  0xd4   :  { %v383_v32 = vor.u32 1.1754944e-38, %v382_v6  ;;  %vm381_vm9 = vcmp.eq.f32.partialorder %v380_v63, 8.507059e+37 }
  0xd8   :  { %v1261_v59 = vpop.eup %1260 }
  0xd9   :  { %v372_v60 = vmul.f32 %v1261_v59, %v370_v47  ;;  %vm377_vm6 = vweird.f32 %v1261_v59  ;;  %v1263_v25 = vpop.eup %1262  ;;  %v2576_v47 = vld [vmem:[#allocation5_spill] sm:$0xff] }
  0xda   :  { %vm378_vm8 = vmor %vm376_vm7, %vm377_vm6  ;;  %v390_v62 = vsub.f32 0.0, %v1263_v25 }
  0xdb   :  { %v373_v28 = vsub.f32 1.0, %v372_v60  ;;  %v2022_v60 = vpop.f32.mrf.mxu1  ;;  %v2024_v6 = vpop.f32.mrf.mxu2 }
  0xdc   :  { %2578 = vst [vmem:[#allocation20_spill] sm:$0xff] %v2022_v60 }
  0xdd   :  { %v374_v16 = vmul.f32 %v1261_v59, %v373_v28  ;;  %v2573_v28 = vld [vmem:[#allocation4_spill] sm:$0xff]  ;;  %2579 = vst [vmem:[#allocation21_spill] sm:$0xff] %v2024_v6 }
  0xdf   :  { %v375_v8 = vadd.f32 %v1261_v59, %v374_v16 }
  0xe1   :  { %v379_v35 = vsel %vm378_vm8, %v1261_v59, %v375_v8  ;;  %v2574_v59 = vld [vmem:[#allocation10_spill] sm:$0xff] }
  0xe2   :  { %v384_v2 = vsel %vm381_vm9, %v383_v32, %v379_v35 }
  0xe3   :  { %v391_v57 = vmul.f32 %v390_v62, %v384_v2  ;;  %v2026_v16 = vpop.f32.mrf.mxu1  ;;  %v2028_v63 = vpop.f32.mrf.mxu2 }
  0xe4   :  { %2580 = vst [vmem:[#allocation22_spill] sm:$0xff] %v2026_v16  ;;  %v2590_v16 = vld [vmem:[#allocation12_spill] sm:$0xff] }
  0xe5   :  { %v1969_v43 = vadd.f32 %v1263_v25, %v391_v57  ;;  %2581 = vst [vmem:[#allocation23_spill] sm:$0xff] %v2028_v63 }
  0xe7   :  { %412 = vmatmul.f32.vlgmr.msrb.gmra.mxu1 %v1969_v43  ;;  %432 = vmatmul.f32.vlgmr.msrb.gmra.mxu2 %v1969_v43 }
  0xe8   :  { %452 = vmatmul.f32.vlgmr.msra.gmra.mxu3 %v1969_v43  ;;  %656 = vmatpush.msrb.mxu1 %v1470_v9 }
  0xe9   :  { %726 = vmatpush.msrb.mxu2 %v1427_v0  ;;  %746 = vmatpush.msra.mxu3 %v1614_v33 }
  0xea   :  { %657 = vmatpush.msrb.mxu1 %v1484_v11 }
  0xeb   :  { %727 = vmatpush.msrb.mxu2 %v1432_v1  ;;  %747 = vmatpush.msra.mxu3 %v1627_v36  ;;  %v2030_v25 = vpop.f32.mrf.mxu1  ;;  %v2032_v8 = vpop.f32.mrf.mxu2 }
  0xec   :  { %658 = vmatpush.msrb.mxu1 %v1496_v13  ;;  %2582 = vst [vmem:[#allocation24_spill] sm:$0xff] %v2030_v25 }
  0xed   :  { %728 = vmatpush.msrb.mxu2 %v1441_v3  ;;  %748 = vmatpush.msra.mxu3 %v1639_v38  ;;  %2583 = vst [vmem:[#allocation25_spill] sm:$0xff] %v2032_v8 }
  0xee   :  { %659 = vmatpush.msrb.mxu1 %v1508_v15 }
  0xef   :  { %729 = vmatpush.msrb.mxu2 %v1447_v4  ;;  %749 = vmatpush.msra.mxu3 %v1658_v42 }
  0xf0   :  { %660 = vmatpush.msrb.mxu1 %v1525_v18 }
  0xf1   :  { %730 = vmatpush.msrb.mxu2 %v1453_v5  ;;  %750 = vmatpush.msra.mxu3 %v1673_v45 }
  0xf2   :  { %661 = vmatpush.msrb.mxu1 %v1539_v20 }
  0xf3   :  { %731 = vmatpush.msrb.mxu2 %v1464_v7  ;;  %751 = vmatpush.msra.mxu3 %v1693_v48  ;;  %v2034_v32 = vpop.f32.mrf.mxu1  ;;  %v2036_v62 = vpop.f32.mrf.mxu2 }
  0xf4   :  { %662 = vmatpush.msrb.mxu1 %v1551_v22  ;;  %2584 = vst [vmem:[#allocation26_spill] sm:$0xff] %v2034_v32 }
  0xf5   :  { %732 = vmatpush.msrb.mxu2 %v1476_v10  ;;  %752 = vmatpush.msra.mxu3 %v1702_v49  ;;  %2585 = vst [vmem:[#allocation27_spill] sm:$0xff] %v2036_v62 }
  0xf6   :  { %663 = vmatpush.msrb.mxu1 %v1563_v24 }
  0xf7   :  { %733 = vmatpush.msrb.mxu2 %v1489_v12  ;;  %753 = vmatpush.msra.mxu3 %v1712_v50 }
  0xf8   :  { %664 = vmatpush.msrb.mxu1 %v1580_v27 }
  0xf9   :  { %734 = vmatpush.msrb.mxu2 %v1501_v14  ;;  %754 = vmatpush.msra.mxu3 %v1722_v51 }
  0xfa   :  { %665 = vmatpush.msrb.mxu1 %v1594_v29 }
  0xfb   :  { %735 = vmatpush.msrb.mxu2 %v1518_v17  ;;  %755 = vmatpush.msra.mxu3 %v1737_v53  ;;  %v2038_v35 = vpop.f32.mrf.mxu1  ;;  %v2040_v2 = vpop.f32.mrf.mxu2 }
  0xfc   :  { %666 = vmatpush.msrb.mxu1 %v1606_v31  ;;  %2586 = vst [vmem:[#allocation28_spill] sm:$0xff] %v2038_v35 }
  0xfd   :  { %736 = vmatpush.msrb.mxu2 %v1530_v19  ;;  %756 = vmatpush.msra.mxu3 %v1746_v54  ;;  %2587 = vst [vmem:[#allocation29_spill] sm:$0xff] %v2040_v2 }
  0xfe   :  { %667 = vmatpush.msrb.mxu1 %v1633_v37 }
  0xff   :  { %737 = vmatpush.msrb.mxu2 %v1544_v21  ;;  %757 = vmatpush.msra.mxu3 %v1756_v55 }
 0x100   :  { %668 = vmatpush.msrb.mxu1 %v1648_v40 }
 0x101   :  { %738 = vmatpush.msrb.mxu2 %v1556_v23  ;;  %758 = vmatpush.msra.mxu3 %v1766_v56 }
 0x102   :  { %669 = vmatpush.msrb.mxu1 %v1653_v41 }
 0x103   :  { %739 = vmatpush.msrb.mxu2 %v1573_v26  ;;  %759 = vmatpush.msra.mxu3 %v1781_v58  ;;  %v2042_v57 = vpop.f32.mrf.mxu1  ;;  %v2044_v60 = vpop.f32.mrf.mxu2 }
 0x104   :  { %670 = vmatpush.msrb.mxu1 %v1668_v44  ;;  %2588 = vst [vmem:[#allocation30_spill] sm:$0xff] %v2042_v57 }
 0x105   :  { %740 = vmatpush.msrb.mxu2 %v2573_v28  ;;  %760 = vmatpush.msra.mxu3 %v2574_v59  ;;  %2589 = vst [vmem:[#allocation31_spill] sm:$0xff] %v2044_v60 }
 0x106   :  { %671 = vmatpush.msrb.mxu1 %v2575_v34 }
 0x107   :  { %741 = vmatpush.msrb.mxu2 %v2576_v47  ;;  %761 = vmatpush.msra.mxu3 %v2577_v52  ;;  %v2591_v47 = vld [vmem:[#allocation18_spill] sm:$0xff] }
 0x108   :  { %v146_v25 = vadd.f32 %v145_v61, %v2591_v47 }
 0x164   :  { %v413_v6 = vpop.f32.mrf.mxu1 }
 0x165   :  { %v456_v52 = vadd.f32 %v413_v6, %v2590_v16 }
 0x167   :  { %v1237_v63 = vmul.f32 -1.442695, %v456_v52 }
 0x169   :  { %1264 = vpow2.f32 %v1237_v63 }
 0x16a   :  { %v433_v8 = vpop.f32.mrf.mxu2 }
 0x16b   :  { %v476_v34 = vadd.f32 %v433_v8, %v146_v25  ;;  %v453_v61 = vpop.f32.mrf.mxu3 }
 0x16c   :  { %v496_v8 = vadd.f32 %v1963_v46, %v453_v61 }
 0x16d   :  { %v1238_v32 = vmul.f32 -1.442695, %v476_v34 }
 0x16f   :  { %v1265_v59 = vpop.eup %1264  ;;  %1266 = vpow2.f32 %v1238_v32 }
 0x170   :  { %v460_v62 = vadd.f32 1.0, %v1265_v59 }
 0x172   :  { %1268 = vrcp.f32 %v460_v62  ;;  %v472_v44 = vand.u32 2147483648, %v460_v62  ;;  %v470_v52 = vand.u32 2147483647, %v460_v62  ;;  %vm466_vm11 = vweird.f32 %v460_v62 }
 0x174   :  { %v473_v34 = vor.u32 1.1754944e-38, %v472_v44  ;;  %vm471_vm13 = vcmp.eq.f32.partialorder %v470_v52, 8.507059e+37 }
 0x175   :  { %v1267_v35 = vpop.eup %1266 }
 0x176   :  { %v480_v2 = vadd.f32 1.0, %v1267_v35  ;;  %v187_v35 = vadd.f32 %v186_v30, %v1966_v39 }
 0x178   :  { %v1269_v28 = vpop.eup %1268  ;;  %1270 = vrcp.f32 %v480_v2  ;;  %v492_v41 = vand.u32 2147483648, %v480_v2  ;;  %vm486_vm15 = vweird.f32 %v480_v2 }
 0x179   :  { %v462_v57 = vmul.f32 %v1269_v28, %v460_v62  ;;  %vm467_vm10 = vweird.f32 %v1269_v28 }
 0x17a   :  { %vm468_vm12 = vmor %vm466_vm11, %vm467_vm10 }
 0x17b   :  { %v463_v60 = vsub.f32 1.0, %v462_v57 }
 0x17d   :  { %v464_v58 = vmul.f32 %v1269_v28, %v463_v60 }
 0x17e   :  { %v1271_v6 = vpop.eup %1270 }
 0x17f   :  { %v482_v16 = vmul.f32 %v1271_v6, %v480_v2  ;;  %v465_v63 = vadd.f32 %v1269_v28, %v464_v58  ;;  %vm487_vm14 = vweird.f32 %v1271_v6  ;;  %v490_v58 = vand.u32 2147483647, %v480_v2 }
 0x180   :  { %vm488_vm0 = vmor %vm486_vm15, %vm487_vm14 }
 0x181   :  { %v483_v25 = vsub.f32 1.0, %v482_v16  ;;  %v469_v59 = vsel %vm468_vm12, %v1269_v28, %v465_v63  ;;  %v493_v16 = vor.u32 1.1754944e-38, %v492_v41  ;;  %vm491_vm1 = vcmp.eq.f32.partialorder %v490_v58, 8.507059e+37 }
 0x182   :  { %v474_v32 = vsel %vm471_vm13, %v473_v34, %v469_v59 }
 0x183   :  { %v497_v57 = vmul.f32 %v496_v8, %v474_v32  ;;  %v484_v47 = vmul.f32 %v1271_v6, %v483_v25  ;;  %v2604_v32 = vld [vmem:[#allocation21_spill] sm:$0xff] }
 0x185   :  { %v498_v60 = vadd.f32 %v497_v57, %v187_v35  ;;  %v485_v26 = vadd.f32 %v1271_v6, %v484_v47  ;;  %v190_v35 = vadd.f32 %v2604_v32, %v1966_v39 }
 0x187   :  { %1272 = vtanh.f32 %v498_v60  ;;  %v489_v62 = vsel %vm488_vm0, %v1271_v6, %v485_v26 }
 0x188   :  { %v494_v52 = vsel %vm491_vm1, %v493_v16, %v489_v62 }
 0x18d   :  { %v1273_v44 = vpop.eup %1272 }
 0x18e   :  { %v500_v28 = vsub.f32 %v1969_v43, %v1273_v44 }
 0x190   :  { %v501_v61 = vmul.f32 %v500_v28, %v494_v52 }
 0x192   :  { %v2051_v63 = vadd.f32 %v1273_v44, %v501_v61 }
 0x194   :  { %522 = vmatmul.f32.vlgmr.msra.gmra.mxu0 %v2051_v63  ;;  %542 = vmatmul.f32.vlgmr.msra.gmra.mxu1 %v2051_v63 }
 0x195   :  { %562 = vmatmul.f32.vlgmr.msra.gmra.mxu2 %v2051_v63  ;;  %766 = vmatpush.msra.mxu0 %v1470_v9  ;;  %v2598_v9 = vld [vmem:[#allocation8_spill] sm:$0xff] }
 0x196   :  { %836 = vmatpush.msra.mxu1 %v1427_v0  ;;  %856 = vmatpush.msra.mxu2 %v1614_v33  ;;  %v2592_v0 = vld [vmem:[#allocation6_spill] sm:$0xff] }
 0x197   :  { %767 = vmatpush.msra.mxu0 %v1484_v11  ;;  %v2600_v11 = vld [vmem:[#allocation11_spill] sm:$0xff] }
 0x198   :  { %837 = vmatpush.msra.mxu1 %v1432_v1  ;;  %857 = vmatpush.msra.mxu2 %v1627_v36  ;;  %v2593_v1 = vld [vmem:[#allocation3_spill] sm:$0xff] }
 0x199   :  { %768 = vmatpush.msra.mxu0 %v1496_v13  ;;  %v2602_v13 = vld [vmem:[#allocation20_spill] sm:$0xff] }
 0x19a   :  { %838 = vmatpush.msra.mxu1 %v1441_v3  ;;  %858 = vmatpush.msra.mxu2 %v1639_v38  ;;  %v2594_v3 = vld [vmem:[#allocation9_spill] sm:$0xff] }
 0x19b   :  { %769 = vmatpush.msra.mxu0 %v1508_v15 }
 0x19c   :  { %839 = vmatpush.msra.mxu1 %v1447_v4  ;;  %859 = vmatpush.msra.mxu2 %v1658_v42  ;;  %v2595_v4 = vld [vmem:[#allocation7_spill] sm:$0xff] }
 0x19d   :  { %770 = vmatpush.msra.mxu0 %v1525_v18  ;;  %v2603_v18 = vld [vmem:[#allocation13_spill] sm:$0xff] }
 0x19e   :  { %840 = vmatpush.msra.mxu1 %v1453_v5  ;;  %860 = vmatpush.msra.mxu2 %v1673_v45  ;;  %v2596_v5 = vld [vmem:[#allocation4_spill] sm:$0xff] }
 0x19f   :  { %771 = vmatpush.msra.mxu0 %v1539_v20 }
 0x1a0   :  { %841 = vmatpush.msra.mxu1 %v1464_v7  ;;  %861 = vmatpush.msra.mxu2 %v1693_v48  ;;  %v2597_v7 = vld [vmem:[#allocation10_spill] sm:$0xff] }
 0x1a1   :  { %772 = vmatpush.msra.mxu0 %v1551_v22 }
 0x1a2   :  { %842 = vmatpush.msra.mxu1 %v1476_v10  ;;  %862 = vmatpush.msra.mxu2 %v1702_v49  ;;  %v2599_v10 = vld [vmem:[#allocation5_spill] sm:$0xff] }
 0x1a3   :  { %773 = vmatpush.msra.mxu0 %v1563_v24 }
 0x1a4   :  { %843 = vmatpush.msra.mxu1 %v1489_v12  ;;  %863 = vmatpush.msra.mxu2 %v1712_v50  ;;  %v2601_v12 = vld [vmem:[#allocation18_spill] sm:$0xff] }
 0x1a5   :  { %774 = vmatpush.msra.mxu0 %v1580_v27 }
 0x1a6   :  { %844 = vmatpush.msra.mxu1 %v1501_v14  ;;  %864 = vmatpush.msra.mxu2 %v1722_v51  ;;  %v149_v14 = vadd.f32 %v2602_v13, %v2601_v12  ;;  %v2137_v13 = vld [vmem:[%s2531_s4 + $0x160] sm:$0xff] }
 0x1a7   :  { %775 = vmatpush.msra.mxu0 %v1594_v29 }
 0x1a8   :  { %845 = vmatpush.msra.mxu1 %v1518_v17  ;;  %865 = vmatpush.msra.mxu2 %v1737_v53 }
 0x1a9   :  { %776 = vmatpush.msra.mxu0 %v1606_v31 }
 0x1aa   :  { %846 = vmatpush.msra.mxu1 %v1530_v19  ;;  %866 = vmatpush.msra.mxu2 %v1746_v54 }
 0x1ab   :  { %777 = vmatpush.msra.mxu0 %v1633_v37 }
 0x1ac   :  { %847 = vmatpush.msra.mxu1 %v1544_v21  ;;  %867 = vmatpush.msra.mxu2 %v1756_v55 }
 0x1ad   :  { %778 = vmatpush.msra.mxu0 %v1648_v40 }
 0x1ae   :  { %848 = vmatpush.msra.mxu1 %v1556_v23  ;;  %868 = vmatpush.msra.mxu2 %v1766_v56 }
 0x1af   :  { %779 = vmatpush.msra.mxu0 %v2592_v0 }
 0x1b0   :  { %849 = vmatpush.msra.mxu1 %v2593_v1  ;;  %869 = vmatpush.msra.mxu2 %v2594_v3 }
 0x1b1   :  { %780 = vmatpush.msra.mxu0 %v2595_v4 }
 0x1b2   :  { %850 = vmatpush.msra.mxu1 %v2596_v5  ;;  %870 = vmatpush.msra.mxu2 %v2597_v7 }
 0x1b3   :  { %781 = vmatpush.msra.mxu0 %v2598_v9  ;;  %v2119_v9 = vld [vmem:[%s2531_s4 + $0x178] sm:$0xff] }
 0x1b4   :  { %851 = vmatpush.msra.mxu1 %v2599_v10  ;;  %871 = vmatpush.msra.mxu2 %v2600_v11  ;;  %v2131_v10 = vld [vmem:[%s2531_s4 + $0x170] sm:$0xff] }
 0x211   :  { %v523_v15 = vpop.f32.mrf.mxu0  ;;  %v543_v17 = vpop.f32.mrf.mxu1 }
 0x212   :  { %v566_v19 = vadd.f32 %v523_v15, %v2603_v18  ;;  %v586_v20 = vadd.f32 %v543_v17, %v149_v14  ;;  %v2143_v14 = vld [vmem:[%s2531_s4 + $0x150] sm:$0xff]  ;;  %v2150_v15 = vld [vmem:[%s2531_s4 + $0x148] sm:$0xff]  ;;  %v2156_v17 = vld [vmem:[%s2531_s4 + $0x138] sm:$0xff] }
 0x213   :  { %v2169_v18 = vld [vmem:[%s2531_s4 + $0x120] sm:$0xff] }
 0x214   :  { %v1239_v21 = vmul.f32 -1.442695, %v566_v19  ;;  %v1240_v22 = vmul.f32 -1.442695, %v586_v20  ;;  %v2182_v19 = vld [vmem:[%s2531_s4 + $0x108] sm:$0xff]  ;;  %v2195_v20 = vld [vmem:[%s2531_s4 + $0xf0] sm:$0xff] }
 0x216   :  { %1274 = vpow2.f32 %v1239_v21  ;;  %v2208_v21 = vld [vmem:[%s2531_s4 + $0xd8] sm:$0xff] }
 0x217   :  { %1276 = vpow2.f32 %v1240_v22  ;;  %v2221_v22 = vld [vmem:[%s2531_s4 + $0xc0] sm:$0xff] }
 0x218   :  { %v563_v30 = vpop.f32.mrf.mxu2 }
 0x219   :  { %v606_v59 = vadd.f32 %v1963_v46, %v563_v30 }
 0x21c   :  { %v1275_v23 = vpop.eup %1274 }
 0x21d   :  { %v1277_v24 = vpop.eup %1276  ;;  %v570_v26 = vadd.f32 1.0, %v1275_v23  ;;  %v2234_v23 = vld [vmem:[%s2531_s4 + $0xa8] sm:$0xff] }
 0x21e   :  { %v590_v27 = vadd.f32 1.0, %v1277_v24  ;;  %v2247_v24 = vld [vmem:[%s2531_s4 + $0x90] sm:$0xff] }
 0x21f   :  { %1278 = vrcp.f32 %v570_v26  ;;  %v582_v41 = vand.u32 2147483648, %v570_v26  ;;  %v580_v47 = vand.u32 2147483647, %v570_v26  ;;  %vm576_vm3 = vweird.f32 %v570_v26 }
 0x220   :  { %1280 = vrcp.f32 %v590_v27  ;;  %v602_v44 = vand.u32 2147483648, %v590_v27  ;;  %vm596_vm7 = vweird.f32 %v590_v27  ;;  %v600_v16 = vand.u32 2147483647, %v590_v27 }
 0x221   :  { %v583_v34 = vor.u32 1.1754944e-38, %v582_v41  ;;  %vm581_vm5 = vcmp.eq.f32.partialorder %v580_v47, 8.507059e+37 }
 0x222   :  { %v603_v61 = vor.u32 1.1754944e-38, %v602_v44  ;;  %vm601_vm9 = vcmp.eq.f32.partialorder %v600_v16, 8.507059e+37 }
 0x225   :  { %v1279_v29 = vpop.eup %1278 }
 0x226   :  { %v1281_v31 = vpop.eup %1280  ;;  %v572_v33 = vmul.f32 %v1279_v29, %v570_v26  ;;  %vm577_vm2 = vweird.f32 %v1279_v29  ;;  %v2260_v26 = vld [vmem:[%s2531_s4 + $0x78] sm:$0xff] }
 0x227   :  { %v592_v40 = vmul.f32 %v1281_v31, %v590_v27  ;;  %vm578_vm4 = vmor %vm576_vm3, %vm577_vm2  ;;  %vm597_vm6 = vweird.f32 %v1281_v31  ;;  %v2273_v27 = vld [vmem:[%s2531_s4 + $0x60] sm:$0xff] }
 0x228   :  { %v573_v37 = vsub.f32 1.0, %v572_v33  ;;  %vm598_vm8 = vmor %vm596_vm7, %vm597_vm6  ;;  %v2312_v33 = vld [vmem:[%s2531_s4 + $0x18] sm:$0xff] }
 0x229   :  { %v593_v6 = vsub.f32 1.0, %v592_v40  ;;  %v2605_v40 = vld [vmem:[#allocation22_spill] sm:$0xff] }
 0x22a   :  { %v574_v43 = vmul.f32 %v1279_v29, %v573_v37  ;;  %v2325_v37 = vld [vmem:[%s2531_s4] sm:$0xff]  ;;  %v152_v41 = vadd.f32 %v2605_v40, %v2601_v12 }
 0x22b   :  { %v594_v60 = vmul.f32 %v1281_v31, %v593_v6 }
 0x22c   :  { %v575_v2 = vadd.f32 %v1279_v29, %v574_v43 }
 0x22d   :  { %v595_v62 = vadd.f32 %v1281_v31, %v594_v60 }
 0x22e   :  { %v579_v25 = vsel %vm578_vm4, %v1279_v29, %v575_v2  ;;  %v2286_v29 = vld [vmem:[%s2531_s4 + $0x48] sm:$0xff]  ;;  %v2606_v2 = vld [vmem:[#allocation14_spill] sm:$0xff] }
 0x22f   :  { %v584_v8 = vsel %vm581_vm5, %v583_v34, %v579_v25  ;;  %v599_v28 = vsel %vm598_vm8, %v1281_v31, %v595_v62  ;;  %v2299_v31 = vld [vmem:[%s2531_s4 + $0x30] sm:$0xff] }
 0x230   :  { %v607_v57 = vmul.f32 %v606_v59, %v584_v8  ;;  %v604_v1 = vsel %vm601_vm9, %v603_v61, %v599_v28 }
 0x232   :  { %v608_v58 = vadd.f32 %v607_v57, %v190_v35 }
 0x234   :  { %1282 = vtanh.f32 %v608_v58 }
 0x23a   :  { %v1283_v52 = vpop.eup %1282 }
 0x23b   :  { %v610_v0 = vsub.f32 %v2051_v63, %v1283_v52  ;;  %v2125_v63 = vld [vmem:[%s2531_s4 + $0x168] sm:$0xff] }
 0x23d   :  { %v611_v4 = vmul.f32 %v610_v0, %v604_v1 }
 0x23f   :  { %v2111_v5 = vadd.f32 %v1283_v52, %v611_v4 }
 0x241   :  { %632 = vmatmul.f32.vlgmr.msrb.gmra.mxu3 %v2111_v5  ;;  %652 = vmatmul.f32.vlgmr.msrb.gmra.mxu0 %v2111_v5 }
 0x242   :  { %672 = vmatmul.f32.vlgmr.msrb.gmra.mxu1 %v2111_v5  ;;  %876 = vmatpush.msrb.mxu3 %v2119_v9 }
 0x243   :  { %946 = vmatpush.msrb.mxu0 %v2125_v63  ;;  %966 = vmatpush.msrb.mxu1 %v2131_v10 }
 0x244   :  { %877 = vmatpush.msrb.mxu3 %v2137_v13 }
 0x245   :  { %947 = vmatpush.msrb.mxu0 %v2143_v14  ;;  %967 = vmatpush.msrb.mxu1 %v1627_v36  ;;  %v2163_v36 = vld [vmem:[%s2531_s4 + $0x130] sm:$0xff] }
 0x246   :  { %878 = vmatpush.msrb.mxu3 %v2150_v15 }
 0x247   :  { %948 = vmatpush.msrb.mxu0 %v2156_v17  ;;  %968 = vmatpush.msrb.mxu1 %v1639_v38  ;;  %v2176_v38 = vld [vmem:[%s2531_s4 + $0x118] sm:$0xff] }
 0x248   :  { %879 = vmatpush.msrb.mxu3 %v2163_v36 }
 0x249   :  { %949 = vmatpush.msrb.mxu0 %v2169_v18  ;;  %969 = vmatpush.msrb.mxu1 %v1658_v42  ;;  %v2189_v42 = vld [vmem:[%s2531_s4 + $0x100] sm:$0xff] }
 0x24a   :  { %880 = vmatpush.msrb.mxu3 %v2176_v38 }
 0x24b   :  { %950 = vmatpush.msrb.mxu0 %v2182_v19  ;;  %970 = vmatpush.msrb.mxu1 %v1673_v45  ;;  %v2202_v45 = vld [vmem:[%s2531_s4 + $0xe8] sm:$0xff] }
 0x24c   :  { %881 = vmatpush.msrb.mxu3 %v2189_v42 }
 0x24d   :  { %951 = vmatpush.msrb.mxu0 %v2195_v20  ;;  %971 = vmatpush.msrb.mxu1 %v1693_v48  ;;  %v2215_v48 = vld [vmem:[%s2531_s4 + $0xd0] sm:$0xff] }
 0x24e   :  { %882 = vmatpush.msrb.mxu3 %v2202_v45 }
 0x24f   :  { %952 = vmatpush.msrb.mxu0 %v2208_v21  ;;  %972 = vmatpush.msrb.mxu1 %v1702_v49  ;;  %v2228_v49 = vld [vmem:[%s2531_s4 + $0xb8] sm:$0xff] }
 0x250   :  { %883 = vmatpush.msrb.mxu3 %v2215_v48 }
 0x251   :  { %953 = vmatpush.msrb.mxu0 %v2221_v22  ;;  %973 = vmatpush.msrb.mxu1 %v1712_v50  ;;  %v2241_v50 = vld [vmem:[%s2531_s4 + $0xa0] sm:$0xff] }
 0x252   :  { %884 = vmatpush.msrb.mxu3 %v2228_v49 }
 0x253   :  { %954 = vmatpush.msrb.mxu0 %v2234_v23  ;;  %974 = vmatpush.msrb.mxu1 %v1722_v51  ;;  %v2254_v51 = vld [vmem:[%s2531_s4 + $0x88] sm:$0xff] }
 0x254   :  { %885 = vmatpush.msrb.mxu3 %v2241_v50 }
 0x255   :  { %955 = vmatpush.msrb.mxu0 %v2247_v24  ;;  %975 = vmatpush.msrb.mxu1 %v1737_v53  ;;  %v2267_v53 = vld [vmem:[%s2531_s4 + $0x70] sm:$0xff] }
 0x256   :  { %886 = vmatpush.msrb.mxu3 %v2254_v51 }
 0x257   :  { %956 = vmatpush.msrb.mxu0 %v2260_v26  ;;  %976 = vmatpush.msrb.mxu1 %v1746_v54  ;;  %v2280_v54 = vld [vmem:[%s2531_s4 + $0x58] sm:$0xff] }
 0x258   :  { %887 = vmatpush.msrb.mxu3 %v2267_v53 }
 0x259   :  { %957 = vmatpush.msrb.mxu0 %v2273_v27  ;;  %977 = vmatpush.msrb.mxu1 %v1756_v55  ;;  %v2293_v55 = vld [vmem:[%s2531_s4 + $0x40] sm:$0xff] }
 0x25a   :  { %888 = vmatpush.msrb.mxu3 %v2280_v54 }
 0x25b   :  { %958 = vmatpush.msrb.mxu0 %v2286_v29  ;;  %978 = vmatpush.msrb.mxu1 %v1766_v56  ;;  %v2306_v56 = vld [vmem:[%s2531_s4 + $0x28] sm:$0xff] }
 0x25c   :  { %889 = vmatpush.msrb.mxu3 %v2293_v55 }
 0x25d   :  { %959 = vmatpush.msrb.mxu0 %v2299_v31  ;;  %979 = vmatpush.msrb.mxu1 %v2594_v3  ;;  %v2319_v3 = vld [vmem:[%s2531_s4 + $0x10] sm:$0xff] }
 0x25e   :  { %890 = vmatpush.msrb.mxu3 %v2306_v56 }
 0x25f   :  { %960 = vmatpush.msrb.mxu0 %v2312_v33  ;;  %980 = vmatpush.msrb.mxu1 %v2597_v7 }
 0x260   :  { %891 = vmatpush.msrb.mxu3 %v2319_v3 }
 0x261   :  { %961 = vmatpush.msrb.mxu0 %v2325_v37  ;;  %981 = vmatpush.msrb.mxu1 %v2600_v11 }
 0x2be   :  { %v653_v7 = vpop.f32.mrf.mxu0 }
 0x2bf   :  { %v696_v43 = vadd.f32 %v653_v7, %v152_v41  ;;  %v673_v28 = vpop.f32.mrf.mxu1  ;;  %v2607_v41 = vld [vmem:[#allocation23_spill] sm:$0xff] }
 0x2c0   :  { %v716_v1 = vadd.f32 %v1963_v46, %v673_v28  ;;  %v193_v7 = vadd.f32 %v2607_v41, %v1966_v39 }
 0x2c1   :  { %v1242_v47 = vmul.f32 -1.442695, %v696_v43 }
 0x2c3   :  { %1284 = vpow2.f32 %v1242_v47 }
 0x2c4   :  { %v633_v30 = vpop.f32.mrf.mxu3 }
 0x2c5   :  { %v676_v6 = vadd.f32 %v633_v30, %v2606_v2 }
 0x2c7   :  { %v1241_v34 = vmul.f32 -1.442695, %v676_v6 }
 0x2c9   :  { %1286 = vpow2.f32 %v1241_v34  ;;  %v1285_v25 = vpop.eup %1284 }
 0x2ca   :  { %v700_v8 = vadd.f32 1.0, %v1285_v25 }
 0x2cc   :  { %v712_v6 = vand.u32 2147483648, %v700_v8  ;;  %vm706_vm15 = vweird.f32 %v700_v8  ;;  %v710_v34 = vand.u32 2147483647, %v700_v8 }
 0x2ce   :  { %vm711_vm1 = vcmp.eq.f32.partialorder %v710_v34, 8.507059e+37 }
 0x2cf   :  { %v1287_v59 = vpop.eup %1286 }
 0x2d0   :  { %v680_v32 = vadd.f32 1.0, %v1287_v59 }
 0x2d2   :  { %1288 = vrcp.f32 %v680_v32  ;;  %v692_v62 = vand.u32 2147483648, %v680_v32  ;;  %v690_v16 = vand.u32 2147483647, %v680_v32  ;;  %vm686_vm11 = vweird.f32 %v680_v32 }
 0x2d3   :  { %1290 = vrcp.f32 %v700_v8 }
 0x2d4   :  { %v693_v0 = vor.u32 1.1754944e-38, %v692_v62  ;;  %vm691_vm13 = vcmp.eq.f32.partialorder %v690_v16, 8.507059e+37 }
 0x2d8   :  { %v1289_v35 = vpop.eup %1288 }
 0x2d9   :  { %v1291_v11 = vpop.eup %1290  ;;  %v682_v57 = vmul.f32 %v1289_v35, %v680_v32  ;;  %vm687_vm10 = vweird.f32 %v1289_v35  ;;  %v713_v32 = vor.u32 1.1754944e-38, %v712_v6 }
 0x2da   :  { %v702_v58 = vmul.f32 %v1291_v11, %v700_v8  ;;  %vm688_vm12 = vmor %vm686_vm11, %vm687_vm10  ;;  %vm707_vm14 = vweird.f32 %v1291_v11  ;;  %v1368_v8 = vld [vmem:[%s2531_s4 + $0x140] sm:$0xff] }
 0x2db   :  { %v683_v60 = vsub.f32 1.0, %v682_v57  ;;  %vm708_vm0 = vmor %vm706_vm15, %vm707_vm14 }
 0x2dc   :  { %v703_v61 = vsub.f32 1.0, %v702_v58 }
 0x2dd   :  { %v684_v44 = vmul.f32 %v1289_v35, %v683_v60 }
 0x2de   :  { %v704_v47 = vmul.f32 %v1291_v11, %v703_v61 }
 0x2df   :  { %v685_v52 = vadd.f32 %v1289_v35, %v684_v44 }
 0x2e0   :  { %v705_v2 = vadd.f32 %v1291_v11, %v704_v47 }
 0x2e1   :  { %v689_v4 = vsel %vm688_vm12, %v1289_v35, %v685_v52 }
 0x2e2   :  { %v694_v40 = vsel %vm691_vm13, %v693_v0, %v689_v4  ;;  %v709_v25 = vsel %vm708_vm0, %v1291_v11, %v705_v2 }
 0x2e3   :  { %v717_v43 = vmul.f32 %v716_v1, %v694_v40  ;;  %v714_v57 = vsel %vm711_vm1, %v713_v32, %v709_v25 }
 0x2e5   :  { %v718_v30 = vadd.f32 %v717_v43, %v193_v7 }
 0x2e7   :  { %1292 = vtanh.f32 %v718_v30 }
 0x2ed   :  { %v1293_v59 = vpop.eup %1292 }
 0x2ee   :  { %v720_v35 = vsub.f32 %v2111_v5, %v1293_v59  ;;  %v1367_v5 = vld [vmem:[%s2531_s4 + $0x158] sm:$0xff] }
 0x2f0   :  { %v721_v60 = vmul.f32 %v720_v35, %v714_v57 }
 0x2f2   :  { %v2336_v58 = vadd.f32 %v1293_v59, %v721_v60  ;;  %v2610_v60 = vld [vmem:[#allocation25_spill] sm:$0xff] }
 0x2f4   :  { %742 = vmatmul.f32.vlgmr.msrb.gmra.mxu2 %v2336_v58  ;;  %762 = vmatmul.f32.vlgmr.msra.gmra.mxu3 %v2336_v58 }
 0x2f5   :  { %782 = vmatmul.f32.vlgmr.msra.gmra.mxu0 %v2336_v58  ;;  %986 = vmatpush.msrb.mxu2 %v2119_v9 }
 0x2f6   :  { %1056 = vmatpush.msra.mxu3 %v2125_v63  ;;  %1076 = vmatpush.msra.mxu0 %v2131_v10  ;;  %v1369_v63 = vld [vmem:[%s2531_s4 + $0x128] sm:$0xff]  ;;  %v1370_v10 = vld [vmem:[%s2531_s4 + $0x110] sm:$0xff] }
 0x2f7   :  { %987 = vmatpush.msrb.mxu2 %v2137_v13 }
 0x2f8   :  { %1057 = vmatpush.msra.mxu3 %v2143_v14  ;;  %1077 = vmatpush.msra.mxu0 %v1367_v5  ;;  %v1371_v14 = vld [vmem:[%s2531_s4 + $0xf8] sm:$0xff]  ;;  %v196_v5 = vadd.f32 %v2610_v60, %v1966_v39 }
 0x2f9   :  { %988 = vmatpush.msrb.mxu2 %v2150_v15 }
 0x2fa   :  { %1058 = vmatpush.msra.mxu3 %v2156_v17  ;;  %1078 = vmatpush.msra.mxu0 %v1368_v8  ;;  %v1372_v17 = vld [vmem:[%s2531_s4 + $0xe0] sm:$0xff] }
 0x2fb   :  { %989 = vmatpush.msrb.mxu2 %v2163_v36 }
 0x2fc   :  { %1059 = vmatpush.msra.mxu3 %v2169_v18  ;;  %1079 = vmatpush.msra.mxu0 %v1369_v63  ;;  %v1373_v18 = vld [vmem:[%s2531_s4 + $0xc8] sm:$0xff] }
 0x2fd   :  { %990 = vmatpush.msrb.mxu2 %v2176_v38 }
 0x2fe   :  { %1060 = vmatpush.msra.mxu3 %v2182_v19  ;;  %1080 = vmatpush.msra.mxu0 %v1370_v10  ;;  %v1374_v19 = vld [vmem:[%s2531_s4 + $0xb0] sm:$0xff] }
 0x2ff   :  { %991 = vmatpush.msrb.mxu2 %v2189_v42 }
 0x300   :  { %1061 = vmatpush.msra.mxu3 %v2195_v20  ;;  %1081 = vmatpush.msra.mxu0 %v1371_v14  ;;  %v1375_v20 = vld [vmem:[%s2531_s4 + $0x98] sm:$0xff] }
 0x301   :  { %992 = vmatpush.msrb.mxu2 %v2202_v45 }
 0x302   :  { %1062 = vmatpush.msra.mxu3 %v2208_v21  ;;  %1082 = vmatpush.msra.mxu0 %v1372_v17  ;;  %v1376_v21 = vld [vmem:[%s2531_s4 + $0x80] sm:$0xff] }
 0x303   :  { %993 = vmatpush.msrb.mxu2 %v2215_v48 }
 0x304   :  { %1063 = vmatpush.msra.mxu3 %v2221_v22  ;;  %1083 = vmatpush.msra.mxu0 %v1373_v18  ;;  %v1377_v22 = vld [vmem:[%s2531_s4 + $0x68] sm:$0xff] }
 0x305   :  { %994 = vmatpush.msrb.mxu2 %v2228_v49 }
 0x306   :  { %1064 = vmatpush.msra.mxu3 %v2234_v23  ;;  %1084 = vmatpush.msra.mxu0 %v1374_v19  ;;  %v1378_v23 = vld [vmem:[%s2531_s4 + $0x50] sm:$0xff] }
 0x307   :  { %995 = vmatpush.msrb.mxu2 %v2241_v50 }
 0x308   :  { %1065 = vmatpush.msra.mxu3 %v2247_v24  ;;  %1085 = vmatpush.msra.mxu0 %v1375_v20  ;;  %v1379_v24 = vld [vmem:[%s2531_s4 + $0x38] sm:$0xff] }
 0x309   :  { %996 = vmatpush.msrb.mxu2 %v2254_v51 }
 0x30a   :  { %1066 = vmatpush.msra.mxu3 %v2260_v26  ;;  %1086 = vmatpush.msra.mxu0 %v1376_v21  ;;  %v1380_v26 = vld [vmem:[%s2531_s4 + $0x20] sm:$0xff] }
 0x30b   :  { %997 = vmatpush.msrb.mxu2 %v2267_v53 }
 0x30c   :  { %1067 = vmatpush.msra.mxu3 %v2273_v27  ;;  %1087 = vmatpush.msra.mxu0 %v1377_v22  ;;  %v1381_v27 = vld [vmem:[%s2531_s4 + $0x8] sm:$0xff] }
 0x30d   :  { %998 = vmatpush.msrb.mxu2 %v2280_v54 }
 0x30e   :  { %1068 = vmatpush.msra.mxu3 %v2286_v29  ;;  %1088 = vmatpush.msra.mxu0 %v1378_v23  ;;  %v2608_v29 = vld [vmem:[#allocation24_spill] sm:$0xff] }
 0x30f   :  { %999 = vmatpush.msrb.mxu2 %v2293_v55 }
 0x310   :  { %1069 = vmatpush.msra.mxu3 %v2299_v31  ;;  %1089 = vmatpush.msra.mxu0 %v1379_v24  ;;  %v155_v31 = vadd.f32 %v2608_v29, %v2601_v12 }
 0x311   :  { %1000 = vmatpush.msrb.mxu2 %v2306_v56 }
 0x312   :  { %1070 = vmatpush.msra.mxu3 %v2312_v33  ;;  %1090 = vmatpush.msra.mxu0 %v1380_v26  ;;  %v2609_v33 = vld [vmem:[#allocation15_spill] sm:$0xff] }
 0x313   :  { %1001 = vmatpush.msrb.mxu2 %v2319_v3 }
 0x314   :  { %1071 = vmatpush.msra.mxu3 %v2325_v37  ;;  %1091 = vmatpush.msra.mxu0 %v1381_v27 }
 0x372   :  { %v783_v6 = vpop.f32.mrf.mxu0 }
 0x373   :  { %v826_v32 = vadd.f32 %v1963_v46, %v783_v6 }
 0x377   :  { %v743_v11 = vpop.f32.mrf.mxu2  ;;  %v763_v62 = vpop.f32.mrf.mxu3 }
 0x378   :  { %v786_v44 = vadd.f32 %v743_v11, %v2609_v33  ;;  %v806_v16 = vadd.f32 %v763_v62, %v155_v31 }
 0x37a   :  { %v1243_v28 = vmul.f32 -1.442695, %v786_v44  ;;  %v1244_v52 = vmul.f32 -1.442695, %v806_v16 }
 0x37c   :  { %1294 = vpow2.f32 %v1243_v28  ;;  %v2453_v28 = vld [vmem:[%s2534_s3] ss:$0 sm:$0xff] }
 0x37d   :  { %1296 = vpow2.f32 %v1244_v52 }
 0x382   :  { %v1295_v61 = vpop.eup %1294 }
 0x383   :  { %v1297_v0 = vpop.eup %1296  ;;  %v790_v37 = vadd.f32 1.0, %v1295_v61 }
 0x384   :  { %v810_v1 = vadd.f32 1.0, %v1297_v0  ;;  %v2613_v0 = vld [vmem:[#allocation27_spill] sm:$0xff] }
 0x385   :  { %1298 = vrcp.f32 %v790_v37  ;;  %v802_v43 = vand.u32 2147483648, %v790_v37  ;;  %v800_v2 = vand.u32 2147483647, %v790_v37  ;;  %vm796_vm3 = vweird.f32 %v790_v37 }
 0x386   :  { %1300 = vrcp.f32 %v810_v1  ;;  %v822_v17 = vand.u32 2147483648, %v810_v1  ;;  %vm816_vm7 = vweird.f32 %v810_v1  ;;  %v820_v18 = vand.u32 2147483647, %v810_v1 }
 0x387   :  { %v803_v25 = vor.u32 1.1754944e-38, %v802_v43  ;;  %vm801_vm5 = vcmp.eq.f32.partialorder %v800_v2, 8.507059e+37 }
 0x388   :  { %v823_v21 = vor.u32 1.1754944e-38, %v822_v17  ;;  %vm821_vm9 = vcmp.eq.f32.partialorder %v820_v18, 8.507059e+37 }
 0x38b   :  { %v1299_v4 = vpop.eup %1298 }
 0x38c   :  { %v1301_v40 = vpop.eup %1300  ;;  %v792_v41 = vmul.f32 %v1299_v4, %v790_v37  ;;  %vm797_vm2 = vweird.f32 %v1299_v4  ;;  %v199_v37 = vadd.f32 %v2613_v0, %v1966_v39  ;;  %v1175_v0 = vld [vmem:[%s2537_s5 + $0x60] sm:$0xff] }
 0x38d   :  { %v812_v47 = vmul.f32 %v1301_v40, %v810_v1  ;;  %vm798_vm4 = vmor %vm796_vm3, %vm797_vm2  ;;  %vm817_vm6 = vweird.f32 %v1301_v40 }
 0x38e   :  { %v793_v7 = vsub.f32 1.0, %v792_v41  ;;  %vm818_vm8 = vmor %vm816_vm7, %vm817_vm6 }
 0x38f   :  { %v813_v59 = vsub.f32 1.0, %v812_v47 }
 0x390   :  { %v794_v30 = vmul.f32 %v1299_v4, %v793_v7 }
 0x391   :  { %v814_v63 = vmul.f32 %v1301_v40, %v813_v59 }
 0x392   :  { %v795_v34 = vadd.f32 %v1299_v4, %v794_v30 }
 0x393   :  { %v815_v14 = vadd.f32 %v1301_v40, %v814_v63 }
 0x394   :  { %v799_v35 = vsel %vm798_vm4, %v1299_v4, %v795_v34 }
 0x395   :  { %v804_v57 = vsel %vm801_vm5, %v803_v25, %v799_v35  ;;  %v819_v19 = vsel %vm818_vm8, %v1301_v40, %v815_v14 }
 0x396   :  { %v827_v8 = vmul.f32 %v826_v32, %v804_v57  ;;  %v824_v22 = vsel %vm821_vm9, %v823_v21, %v819_v19  ;;  %v2614_v32 = vld [vmem:[#allocation28_spill] sm:$0xff] }
 0x397   :  { %v161_v35 = vadd.f32 %v2614_v32, %v2601_v12  ;;  %v1168_v32 = vld [vmem:[%s2537_s5 + $0x28] sm:$0xff] }
 0x398   :  { %v828_v10 = vadd.f32 %v827_v8, %v196_v5  ;;  %v2615_v5 = vld [vmem:[#allocation17_spill] sm:$0xff] }
 0x39a   :  { %1302 = vtanh.f32 %v828_v10 }
 0x3a0   :  { %v1303_v20 = vpop.eup %1302 }
 0x3a1   :  { %v830_v46 = vsub.f32 %v2336_v58, %v1303_v20 }
 0x3a3   :  { %v831_v23 = vmul.f32 %v830_v46, %v824_v22 }
 0x3a5   :  { %v2426_v24 = vadd.f32 %v1303_v20, %v831_v23 }
 0x3a7   :  { %852 = vmatmul.f32.vlgmr.msra.gmra.mxu1 %v2426_v24  ;;  %872 = vmatmul.f32.vlgmr.msra.gmra.mxu2 %v2426_v24 }
 0x3a8   :  { %892 = vmatmul.f32.vlgmr.msrb.gmra.mxu3 %v2426_v24  ;;  %1096 = vmatpush.msra.mxu1 %v2119_v9 }
 0x3aa   :  { %1097 = vmatpush.msra.mxu1 %v2137_v13  ;;  %v2611_v13 = vld [vmem:[#allocation16_spill] sm:$0xff] }
 0x3ac   :  { %1098 = vmatpush.msra.mxu1 %v2150_v15 }
 0x3ae   :  { %1099 = vmatpush.msra.mxu1 %v2163_v36 }
 0x3b0   :  { %1100 = vmatpush.msra.mxu1 %v2176_v38  ;;  %v2612_v38 = vld [vmem:[#allocation26_spill] sm:$0xff] }
 0x3b2   :  { %1101 = vmatpush.msra.mxu1 %v2189_v42  ;;  %v158_v42 = vadd.f32 %v2612_v38, %v2601_v12 }
 0x3b4   :  { %1102 = vmatpush.msra.mxu1 %v2202_v45 }
 0x3b6   :  { %1103 = vmatpush.msra.mxu1 %v2215_v48 }
 0x3b8   :  { %1104 = vmatpush.msra.mxu1 %v2228_v49 }
 0x3ba   :  { %1105 = vmatpush.msra.mxu1 %v2241_v50 }
 0x3bc   :  { %1106 = vmatpush.msra.mxu1 %v2254_v51 }
 0x3be   :  { %1107 = vmatpush.msra.mxu1 %v2267_v53 }
 0x3c0   :  { %1108 = vmatpush.msra.mxu1 %v2280_v54 }
 0x3c2   :  { %1109 = vmatpush.msra.mxu1 %v2293_v55 }
 0x3c4   :  { %1110 = vmatpush.msra.mxu1 %v2306_v56 }
 0x3c6   :  { %1111 = vmatpush.msra.mxu1 %v2319_v3 }
 0x424   :  { %v853_v9 = vpop.f32.mrf.mxu1 }
 0x425   :  { %v896_v15 = vadd.f32 %v853_v9, %v2611_v13 }
 0x427   :  { %v1245_v36 = vmul.f32 -1.442695, %v896_v15 }
 0x429   :  { %1304 = vpow2.f32 %v1245_v36 }
 0x42a   :  { %v873_v45 = vpop.f32.mrf.mxu2 }
 0x42b   :  { %v916_v48 = vadd.f32 %v873_v45, %v158_v42  ;;  %v893_v31 = vpop.f32.mrf.mxu3 }
 0x42c   :  { %v936_v52 = vadd.f32 %v2453_v28, %v893_v31 }
 0x42d   :  { %v1246_v49 = vmul.f32 -1.442695, %v916_v48 }
 0x42f   :  { %v1305_v50 = vpop.eup %1304  ;;  %1306 = vpow2.f32 %v1246_v49 }
 0x430   :  { %v900_v51 = vadd.f32 1.0, %v1305_v50 }
 0x432   :  { %1308 = vrcp.f32 %v900_v51  ;;  %v912_v58 = vand.u32 2147483648, %v900_v51  ;;  %v910_v27 = vand.u32 2147483647, %v900_v51  ;;  %vm906_vm11 = vweird.f32 %v900_v51 }
 0x434   :  { %v913_v33 = vor.u32 1.1754944e-38, %v912_v58  ;;  %vm911_vm13 = vcmp.eq.f32.partialorder %v910_v27, 8.507059e+37 }
 0x435   :  { %v1307_v53 = vpop.eup %1306 }
 0x436   :  { %v920_v54 = vadd.f32 1.0, %v1307_v53 }
 0x438   :  { %v1309_v55 = vpop.eup %1308  ;;  %1310 = vrcp.f32 %v920_v54  ;;  %v932_v7 = vand.u32 2147483648, %v920_v54  ;;  %vm926_vm15 = vweird.f32 %v920_v54  ;;  %v930_v43 = vand.u32 2147483647, %v920_v54 }
 0x439   :  { %v902_v56 = vmul.f32 %v1309_v55, %v900_v51  ;;  %vm907_vm10 = vweird.f32 %v1309_v55  ;;  %v2616_v51 = vld [vmem:[#allocation29_spill] sm:$0xff] }
 0x43a   :  { %vm908_vm12 = vmor %vm906_vm11, %vm907_vm10  ;;  %v933_v2 = vor.u32 1.1754944e-38, %v932_v7  ;;  %vm931_vm1 = vcmp.eq.f32.partialorder %v930_v43, 8.507059e+37  ;;  %v202_v53 = vadd.f32 %v2616_v51, %v1966_v39  ;;  %v1173_v7 = vld [vmem:[%s2537_s5 + $0x50] sm:$0xff]  ;;  %v1172_v43 = vld [vmem:[%s2537_s5 + $0x48] sm:$0xff] }
 0x43b   :  { %v903_v3 = vsub.f32 1.0, %v902_v56 }
 0x43d   :  { %v904_v26 = vmul.f32 %v1309_v55, %v903_v3 }
 0x43e   :  { %v1311_v29 = vpop.eup %1310 }
 0x43f   :  { %v922_v11 = vmul.f32 %v1311_v29, %v920_v54  ;;  %v905_v62 = vadd.f32 %v1309_v55, %v904_v26  ;;  %vm927_vm14 = vweird.f32 %v1311_v29 }
 0x440   :  { %vm928_vm0 = vmor %vm926_vm15, %vm927_vm14 }
 0x441   :  { %v923_v44 = vsub.f32 1.0, %v922_v11  ;;  %v909_v16 = vsel %vm908_vm12, %v1309_v55, %v905_v62 }
 0x442   :  { %v914_v61 = vsel %vm911_vm13, %v913_v33, %v909_v16  ;;  %v1178_v16 = vld [vmem:[%s2537_s5 + $0x78] sm:$0xff] }
 0x443   :  { %v937_v1 = vmul.f32 %v936_v52, %v914_v61  ;;  %v924_v4 = vmul.f32 %v1311_v29, %v923_v44  ;;  %1183 = vmatpush.msra.mxu2 %v1178_v16  ;;  %v1177_v52 = vld [vmem:[%s2537_s5 + $0x70] sm:$0xff]  ;;  %v1176_v61 = vld [vmem:[%s2537_s5 + $0x68] sm:$0xff] }
 0x445   :  { %v938_v40 = vadd.f32 %v937_v1, %v199_v37  ;;  %v925_v41 = vadd.f32 %v1311_v29, %v924_v4  ;;  %1184 = vmatpush.msra.mxu2 %v1177_v52  ;;  %v2617_v37 = vld [vmem:[#allocation30_spill] sm:$0xff]  ;;  %v1174_v4 = vld [vmem:[%s2537_s5 + $0x58] sm:$0xff] }
 0x446   :  { %v164_v1 = vadd.f32 %v2617_v37, %v2601_v12  ;;  %v1171_v12 = vld [vmem:[%s2537_s5 + $0x40] sm:$0xff] }
 0x447   :  { %1312 = vtanh.f32 %v938_v40  ;;  %v929_v47 = vsel %vm928_vm0, %v1311_v29, %v925_v41  ;;  %1185 = vmatpush.msra.mxu2 %v1176_v61 }
 0x448   :  { %v934_v34 = vsel %vm931_vm1, %v933_v2, %v929_v47 }
 0x449   :  { %1186 = vmatpush.msra.mxu2 %v1175_v0 }
 0x44b   :  { %1187 = vmatpush.msra.mxu2 %v1174_v4 }
 0x44d   :  { %v1313_v30 = vpop.eup %1312  ;;  %1188 = vmatpush.msra.mxu2 %v1173_v7 }
 0x44e   :  { %v940_v6 = vsub.f32 %v2426_v24, %v1313_v30 }
 0x44f   :  { %1189 = vmatpush.msra.mxu2 %v1172_v43 }
 0x450   :  { %v941_v25 = vmul.f32 %v940_v6, %v934_v34  ;;  %v2618_v6 = vld [vmem:[#allocation19_spill] sm:$0xff] }
 0x451   :  { %1190 = vmatpush.msra.mxu2 %v1171_v12 }
 0x452   :  { %v942_v59 = vadd.f32 %v1313_v30, %v941_v25  ;;  %v1170_v30 = vld [vmem:[%s2537_s5 + $0x38] sm:$0xff]  ;;  %v1169_v25 = vld [vmem:[%s2537_s5 + $0x30] sm:$0xff] }
 0x453   :  { %1191 = vmatpush.msra.mxu2 %v1170_v30 }
 0x454   :  { %962 = vmatmul.f32.vlgmr.msrb.gmra.mxu0 %v942_v59  ;;  %982 = vmatmul.f32.vlgmr.msrb.gmra.mxu1 %v942_v59 }
 0x455   :  { %1002 = vmatmul.f32.vlgmr.msrb.gmra.mxu2 %v942_v59 }
 0x456   :  { %1192 = vmatpush.msra.mxu2 %v1169_v25 }
 0x458   :  { %1193 = vmatpush.msra.mxu2 %v1168_v32 }
 0x4d1   :  { %v963_v57 = vpop.f32.mrf.mxu0  ;;  %v983_v60 = vpop.f32.mrf.mxu1 }
 0x4d2   :  { %v1006_v8 = vadd.f32 %v963_v57, %v2615_v5  ;;  %v1026_v63 = vadd.f32 %v983_v60, %v161_v35  ;;  %v1167_v35 = vld [vmem:[%s2537_s5 + $0x20] sm:$0xff]  ;;  %v1166_v57 = vld [vmem:[%s2537_s5 + $0x18] sm:$0xff]  ;;  %v1165_v5 = vld [vmem:[%s2537_s5 + $0x10] sm:$0xff] }
 0x4d3   :  { %1194 = vmatpush.msra.mxu2 %v1167_v35 }
 0x4d4   :  { %v1247_v10 = vmul.f32 -1.442695, %v1006_v8  ;;  %v1248_v14 = vmul.f32 -1.442695, %v1026_v63 }
 0x4d5   :  { %1195 = vmatpush.msra.mxu2 %v1166_v57 }
 0x4d6   :  { %1314 = vpow2.f32 %v1247_v10  ;;  %v1164_v10 = vld [vmem:[%s2537_s5 + $0x8] sm:$0xff] }
 0x4d7   :  { %1316 = vpow2.f32 %v1248_v14  ;;  %1196 = vmatpush.msra.mxu2 %v1165_v5 }
 0x4d8   :  { %v1003_v36 = vpop.f32.mrf.mxu2 }
 0x4d9   :  { %v1046_v49 = vadd.f32 %v2453_v28, %v1003_v36  ;;  %1197 = vmatpush.msra.mxu2 %v1164_v10 }
 0x4dc   :  { %v1315_v17 = vpop.eup %1314 }
 0x4dd   :  { %v1317_v18 = vpop.eup %1316  ;;  %v1010_v19 = vadd.f32 1.0, %v1315_v17  ;;  %v1163_v17 = vld [vmem:[%s2537_s5] sm:$0xff] }
 0x4de   :  { %v1030_v20 = vadd.f32 1.0, %v1317_v18  ;;  %1198 = vmatpush.msra.mxu2 %v1163_v17 }
 0x4df   :  { %1318 = vrcp.f32 %v1010_v19  ;;  %v1022_v9 = vand.u32 2147483648, %v1010_v19  ;;  %v1020_v15 = vand.u32 2147483647, %v1010_v19  ;;  %vm1016_vm3 = vweird.f32 %v1010_v19 }
 0x4e0   :  { %1320 = vrcp.f32 %v1030_v20  ;;  %v1042_v58 = vand.u32 2147483648, %v1030_v20  ;;  %vm1036_vm7 = vweird.f32 %v1030_v20  ;;  %v1040_v26 = vand.u32 2147483647, %v1030_v20 }
 0x4e1   :  { %v1023_v45 = vor.u32 1.1754944e-38, %v1022_v9  ;;  %vm1021_vm5 = vcmp.eq.f32.partialorder %v1020_v15, 8.507059e+37 }
 0x4e2   :  { %v1043_v31 = vor.u32 1.1754944e-38, %v1042_v58  ;;  %vm1041_vm9 = vcmp.eq.f32.partialorder %v1040_v26, 8.507059e+37 }
 0x4e5   :  { %v1319_v21 = vpop.eup %1318 }
 0x4e6   :  { %v1321_v46 = vpop.eup %1320  ;;  %v1012_v22 = vmul.f32 %v1319_v21, %v1010_v19  ;;  %vm1017_vm2 = vweird.f32 %v1319_v21 }
 0x4e7   :  { %v1032_v24 = vmul.f32 %v1321_v46, %v1030_v20  ;;  %vm1018_vm4 = vmor %vm1016_vm3, %vm1017_vm2  ;;  %vm1037_vm6 = vweird.f32 %v1321_v46 }
 0x4e8   :  { %v1013_v23 = vsub.f32 1.0, %v1012_v22  ;;  %vm1038_vm8 = vmor %vm1036_vm7, %vm1037_vm6 }
 0x4e9   :  { %v1033_v42 = vsub.f32 1.0, %v1032_v24 }
 0x4ea   :  { %v1014_v13 = vmul.f32 %v1319_v21, %v1013_v23 }
 0x4eb   :  { %v1034_v55 = vmul.f32 %v1321_v46, %v1033_v42 }
 0x4ec   :  { %v1015_v38 = vadd.f32 %v1319_v21, %v1014_v13 }
 0x4ed   :  { %v1035_v3 = vadd.f32 %v1321_v46, %v1034_v55 }
 0x4ee   :  { %v1019_v48 = vsel %vm1018_vm4, %v1319_v21, %v1015_v38 }
 0x4ef   :  { %v1024_v50 = vsel %vm1021_vm5, %v1023_v45, %v1019_v48  ;;  %v1039_v27 = vsel %vm1038_vm8, %v1321_v46, %v1035_v3  ;;  %v2619_v48 = vld [vmem:[#allocation31_spill] sm:$0xff] }
 0x4f0   :  { %v1047_v54 = vmul.f32 %v1046_v49, %v1024_v50  ;;  %v1044_v62 = vsel %vm1041_vm9, %v1043_v31, %v1039_v27  ;;  %v205_v49 = vadd.f32 %v2619_v48, %v1966_v39  ;;  %v1253_v39 = vld [vmem:[%s2536_s6] ss:$0 sm:$0xff] }
 0x4f2   :  { %v1048_v56 = vadd.f32 %v1047_v54, %v202_v53 }
 0x4f4   :  { %1322 = vtanh.f32 %v1048_v56 }
 0x4fa   :  { %v1323_v29 = vpop.eup %1322 }
 0x4fb   :  { %v1050_v11 = vsub.f32 %v942_v59, %v1323_v29 }
 0x4fd   :  { %v1051_v33 = vmul.f32 %v1050_v11, %v1044_v62 }
 0x4ff   :  { %v2465_v44 = vadd.f32 %v1323_v29, %v1051_v33 }
 0x501   :  { %1072 = vmatmul.f32.vlgmr.msra.gmra.mxu3 %v2465_v44  ;;  %1092 = vmatmul.f32.vlgmr.msra.gmra.mxu0 %v2465_v44 }
 0x502   :  { %1112 = vmatmul.f32.vlgmr.msra.gmra.mxu1 %v2465_v44 }
 0x57e   :  { %v1093_v40 = vpop.f32.mrf.mxu0 }
 0x57f   :  { %v1136_v41 = vadd.f32 %v1093_v40, %v164_v1  ;;  %v1113_v9 = vpop.f32.mrf.mxu1 }
 0x580   :  { %v1156_v38 = vadd.f32 %v2453_v28, %v1113_v9 }
 0x581   :  { %v1250_v47 = vmul.f32 -1.442695, %v1136_v41 }
 0x583   :  { %1324 = vpow2.f32 %v1250_v47 }
 0x584   :  { %v1073_v2 = vpop.f32.mrf.mxu3 }
 0x585   :  { %v1116_v34 = vadd.f32 %v1073_v2, %v2618_v6 }
 0x587   :  { %v1249_v59 = vmul.f32 -1.442695, %v1116_v34 }
 0x589   :  { %1326 = vpow2.f32 %v1249_v59  ;;  %v1325_v60 = vpop.eup %1324 }
 0x58a   :  { %v1140_v63 = vadd.f32 1.0, %v1325_v60 }
 0x58c   :  { %v1152_v55 = vand.u32 2147483648, %v1140_v63  ;;  %vm1146_vm15 = vweird.f32 %v1140_v63  ;;  %v1150_v56 = vand.u32 2147483647, %v1140_v63 }
 0x58e   :  { %v1153_v26 = vor.u32 1.1754944e-38, %v1152_v55  ;;  %vm1151_vm1 = vcmp.eq.f32.partialorder %v1150_v56, 8.507059e+37 }
 0x58f   :  { %v1327_v8 = vpop.eup %1326 }
 0x590   :  { %v1120_v14 = vadd.f32 1.0, %v1327_v8 }
 0x592   :  { %1328 = vrcp.f32 %v1120_v14  ;;  %v1132_v22 = vand.u32 2147483648, %v1120_v14  ;;  %v1130_v24 = vand.u32 2147483647, %v1120_v14  ;;  %vm1126_vm11 = vweird.f32 %v1120_v14 }
 0x593   :  { %1330 = vrcp.f32 %v1140_v63 }
 0x594   :  { %v1133_v36 = vor.u32 1.1754944e-38, %v1132_v22  ;;  %vm1131_vm13 = vcmp.eq.f32.partialorder %v1130_v24, 8.507059e+37 }
 0x598   :  { %v1329_v18 = vpop.eup %1328 }
 0x599   :  { %v1331_v19 = vpop.eup %1330  ;;  %v1122_v20 = vmul.f32 %v1329_v18, %v1120_v14  ;;  %vm1127_vm10 = vweird.f32 %v1329_v18 }
 0x59a   :  { %v1142_v46 = vmul.f32 %v1331_v19, %v1140_v63  ;;  %vm1128_vm12 = vmor %vm1126_vm11, %vm1127_vm10  ;;  %vm1147_vm14 = vweird.f32 %v1331_v19 }
 0x59b   :  { %v1123_v21 = vsub.f32 1.0, %v1122_v20  ;;  %vm1148_vm0 = vmor %vm1146_vm15, %vm1147_vm14 }
 0x59c   :  { %v1143_v15 = vsub.f32 1.0, %v1142_v46 }
 0x59d   :  { %v1124_v23 = vmul.f32 %v1329_v18, %v1123_v21 }
 0x59e   :  { %v1144_v51 = vmul.f32 %v1331_v19, %v1143_v15 }
 0x59f   :  { %v1125_v13 = vadd.f32 %v1329_v18, %v1124_v23 }
 0x5a0   :  { %v1145_v54 = vadd.f32 %v1331_v19, %v1144_v51 }
 0x5a1   :  { %v1129_v42 = vsel %vm1128_vm12, %v1329_v18, %v1125_v13 }
 0x5a2   :  { %v1134_v45 = vsel %vm1131_vm13, %v1133_v36, %v1129_v42  ;;  %v1149_v3 = vsel %vm1148_vm0, %v1331_v19, %v1145_v54 }
 0x5a3   :  { %v1157_v50 = vmul.f32 %v1156_v38, %v1134_v45  ;;  %v1154_v27 = vsel %vm1151_vm1, %v1153_v26, %v1149_v3 }
 0x5a5   :  { %v1158_v53 = vadd.f32 %v1157_v50, %v205_v49 }
 0x5a7   :  { %1332 = vtanh.f32 %v1158_v53 }
 0x5ad   :  { %v1333_v58 = vpop.eup %1332 }
 0x5ae   :  { %v1160_v28 = vsub.f32 %v2465_v44, %v1333_v58 }
 0x5b0   :  { %v1161_v29 = vmul.f32 %v1160_v28, %v1154_v27 }
 0x5b2   :  { %v1162_v31 = vadd.f32 %v1333_v58, %v1161_v29 }
 0x5b4   :  { %1199 = vmatmul.f32.vlgmr.msra.gmra.mxu2 %v1162_v31 }
 0x637   :  { %v1200_v11 = vpop.f32.mrf.mxu2 }
 0x638   :  { %v1201_v62 = vadd.f32 %v1253_v39, %v1200_v11 }
 0x63a   :  { %1203 = vst [vmem:[%s2538_s7] sm:$0xff] %v1201_v62 }

</bundles_post_ra>
